<compile_context>
chip_gen: v7x
topology: tpu7x:2x2x1
jax: 0.10.0
libtpu: 0.0.40
codegen_flags: <defaults>
</compile_context>

<pallas_src>
import jax
import jax.numpy as jnp
from jax.experimental import pallas as pl
from jax.experimental.pallas import tpu as pltpu

# ---- small deterministic config (B*C = 128 keeps the lane dimension fully dense) ----
B = 16          # batch
SEQ_LEN = 16    # time_dim (BN num_features, time-MLP width)
ENC_IN = 8      # feat_dim
PRED_LEN = 8
E_LAYERS = 2
FAC_C = True
BN_EPS = 1e-5


# ---------------------------------- in-kernel math helpers ----------------------------------
def _recip(x):
    # EUP approximate reciprocal + one Newton step: off the VALU critical chain, ~1e-7 rel err.
    r = pl.reciprocal(x, approx=True)
    return r * (2.0 - x * r)


def _erf_f32(x):
    # Abramowitz & Stegun 7.1.26 polynomial erf, |abs err| <= 1.5e-7 (close to nn.GELU's erf).
    p = 0.3275911
    a1, a2, a3, a4, a5 = 0.254829592, -0.284496736, 1.421413741, -1.453152027, 1.061405429
    ax = jnp.abs(x)
    t = _recip(1.0 + p * ax)
    poly = ((((a5 * t + a4) * t + a3) * t + a2) * t + a1) * t
    y = 1.0 - poly * jnp.exp(-ax * ax)
    return jnp.where(x < 0.0, -y, y)


def _gelu(x):
    # nn.GELU() exact (erf) form
    return 0.5 * x * (1.0 + _erf_f32(x * 0.7071067811865476))


def _bn_stats(x):
    # BatchNorm1d(T) stats on the [T, B*C] resident layout: two *independent* full-lane reduces
    # per row (sum, sum-of-squares) that issue back-to-back and hide XLU latency.
    inv_n = 1.0 / float(x.shape[1])
    s1 = jnp.sum(x, axis=1, keepdims=True)
    s2 = jnp.sum(x * x, axis=1, keepdims=True)
    mean = s1 * inv_n
    var = jnp.maximum(s2 * inv_n - mean * mean, 0.0)      # guard fp32 cancellation
    inv = jax.lax.rsqrt(var + BN_EPS)
    return mean, inv


# --------------------------------------- the kernel -----------------------------------------
def _tsmixer_kernel(x_ref, wt_ref, wf_ref, av_ref, o_ref, xs_ref):
    Bb, T, C = x_ref.shape
    BC = xs_ref.shape[1]
    L = wf_ref.shape[0]
    P = o_ref.shape[1]

    # ---- fused relayout: natural [B, T, C] -> resident lane-dense [T, B*C] (static strips) ----
    for b in range(Bb):
        xs_ref[:, b * C:(b + 1) * C] = x_ref[b]
    x = xs_ref[...]                                       # [T, 128] f32

    for l in range(L):                                    # static unroll over Mixer layers
        w1 = wt_ref[l * T:(l + 1) * T, :]                 # [T, T]  fc1 weight with BN gamma folded
        base = l * 5 * T                                  # lane-dense [T, BC] vector views (aligned)
        b1b = av_ref[base + 0 * T: base + 1 * T, :]       # fc1 bias + w1@beta (folded, broadcast)
        gmb = av_ref[base + 1 * T: base + 2 * T, :]       # BN gamma (broadcast) for feature block
        btb = av_ref[base + 2 * T: base + 3 * T, :]       # BN beta  (broadcast) for feature block
        bf1 = av_ref[base + 3 * T: base + 4 * T, :]       # feat fc1 bias (broadcast)
        bf2 = av_ref[base + 4 * T: base + 5 * T, :]       # feat fc2 bias (broadcast)

        # ---- time mixing: BN (affine folded into w1/b1) + one [T,T]@[T,BC] MXU matmul ----
        res1 = x
        mean, inv = _bn_stats(x)
        xh = (x - mean) * inv
        x = _gelu(jnp.dot(w1, xh, preferred_element_type=jnp.float32) + b1b) + res1

        if FAC_C:
            # ---- feature mixing: block-diag kron(I_B, W.T) weights keep the [T, BC] layout;
            #      both weights are full [128,128] MXU tiles ----
            wf1 = wf_ref[l, 0]                            # [BC, BC]
            wf2 = wf_ref[l, 1]                            # [BC, BC]
            res2 = x
            mean, inv = _bn_stats(x)
            xn = (x - mean) * inv * gmb + btb             # shared BN module (same gamma/beta)
            h = _gelu(jnp.dot(xn, wf1, preferred_element_type=jnp.float32) + bf1)
            x = jnp.dot(h, wf2, preferred_element_type=jnp.float32) + bf2 + res2

    # ---- temporal projection Linear(T -> P) along time, then scatter straight to [B, P, C] ----
    wp = wt_ref[L * T:L * T + P, :]                       # [P, T]
    bpb = av_ref[L * 5 * T:L * 5 * T + P, :]              # [P, BC] (broadcast bias)
    y = jnp.dot(wp, x, preferred_element_type=jnp.float32) + bpb
    for b in range(Bb):
        o_ref[b] = y[:, b * C:(b + 1) * C].astype(o_ref.dtype)


@jax.jit
def tsmixer_forward(x, packed):
    wt, wf, av = packed
    bsz, T, C = x.shape
    L = wf.shape[0]
    P = wt.shape[0] - L * T
    return pl.pallas_call(
        _tsmixer_kernel,
        out_shape=jax.ShapeDtypeStruct((bsz, P, C), jnp.float32),
        in_specs=[pl.BlockSpec(memory_space=pltpu.MemorySpace.VMEM)] * 4,
        out_specs=pl.BlockSpec(memory_space=pltpu.MemorySpace.VMEM),
        scratch_shapes=[pltpu.VMEM((T, bsz * C), jnp.float32)],
        cost_estimate=pl.CostEstimate(
            flops=2_600_000, transcendentals=20_000, bytes_accessed=420_000),
    )(x.astype(jnp.float32), wt, wf, av)


# ------------------------------------- parameter packing ------------------------------------
def init_raw_params(key):
    # Raw parameters in torch layout ([out, in] weights), used by the pure-JAX reference.
    L, T, C, P = E_LAYERS, SEQ_LEN, ENC_IN, PRED_LEN
    ks = jax.random.split(key, 10)
    gamma = 1.0 + 0.1 * jax.random.normal(ks[0], (L, T, 1), jnp.float32)   # BN weight
    beta = 0.1 * jax.random.normal(ks[1], (L, T, 1), jnp.float32)          # BN bias
    w1 = jax.random.normal(ks[2], (L, T, T), jnp.float32) / jnp.sqrt(T)    # Mlp_time fc1 [out,in]
    b1 = 0.02 * jax.random.normal(ks[3], (L, T, 1), jnp.float32)
    wf1 = jax.random.normal(ks[4], (L, C, C), jnp.float32) / jnp.sqrt(C)   # Mlp_feat fc1 [out,in]
    bf1 = 0.02 * jax.random.normal(ks[5], (L, C), jnp.float32)
    wf2 = jax.random.normal(ks[6], (L, C, C), jnp.float32) / jnp.sqrt(C)   # Mlp_feat fc2 [out,in]
    bf2 = 0.02 * jax.random.normal(ks[7], (L, C), jnp.float32)
    wp = jax.random.normal(ks[8], (P, T), jnp.float32) / jnp.sqrt(T)       # temp_proj [out,in]
    bp = 0.02 * jax.random.normal(ks[9], (P, 1), jnp.float32)
    return gamma, beta, w1, b1, wf1, bf1, wf2, bf2, wp, bp


def pack_params(raw, bsz):
    gamma, beta, w1, b1, wf1, bf1, wf2, bf2, wp, bp = raw
    L, T, _ = w1.shape
    C = wf1.shape[1]
    P = wp.shape[0]
    BC = bsz * C

    # ---- fold the time-block BN affine into fc1 (host-side) ----
    w1f = w1 * jnp.swapaxes(gamma, 1, 2)                       # scale input columns by gamma
    b1f = b1 + jnp.einsum("lij,ljk->lik", w1, beta)            # absorb beta through fc1

    # slab 1: time-mixing weights + projection weight, stacked along 8-aligned rows
    wt = jnp.concatenate([w1f.reshape(L * T, T), wp], axis=0)  # [L*T + P, T]

    # slab 2: feature-mixing weights expanded to block-diag kron(I_B, W.T): full [BC,BC] tiles
    eye = jnp.eye(bsz, dtype=jnp.float32)
    wf1_bd = jnp.einsum("bB,lcd->lbcBd", eye, jnp.swapaxes(wf1, 1, 2)).reshape(L, BC, BC)
    wf2_bd = jnp.einsum("bB,lcd->lbcBd", eye, jnp.swapaxes(wf2, 1, 2)).reshape(L, BC, BC)
    wf = jnp.stack([wf1_bd, wf2_bd], axis=1)                   # [L, 2, BC, BC]

    # slab 3: lane-dense [*, BC] broadcast vectors in 8-row-aligned per-layer chunks:
    #   per layer: [b1', gamma, beta, bf1, bf2] each broadcast to [T, BC]; then bp -> [P, BC]
    def col_bcast(v):                                          # [L, T, 1] -> [L, T, BC]
        return jnp.broadcast_to(v, (L, T, BC))
    bf1b = jnp.broadcast_to(jnp.tile(bf1, (1, bsz))[:, None, :], (L, T, BC))
    bf2b = jnp.broadcast_to(jnp.tile(bf2, (1, bsz))[:, None, :], (L, T, BC))
    av = jnp.stack([col_bcast(b1f), col_bcast(gamma), col_bcast(beta), bf1b, bf2b],
                   axis=1).reshape(L * 5 * T, BC)
    av = jnp.concatenate([av, jnp.broadcast_to(bp, (P, BC))], axis=0)   # [L*5*T + P, BC]
    return wt, wf, av


# ---------------- pure-JAX reference (mirrors the PyTorch forward in [B, T, C]) ----------------
def _gelu_ref(x):
    return 0.5 * x * (1.0 + jax.scipy.special.erf(x * 0.7071067811865476))


def _batchnorm_btc(x, gamma, beta):
    mean = jnp.mean(x, axis=(0, 2), keepdims=True)
    var = jnp.mean((x - mean) ** 2, axis=(0, 2), keepdims=True)
    inv = jax.lax.rsqrt(var + BN_EPS)
    return (x - mean) * inv * gamma[None] + beta[None]


def reference_forward(x, raw):
    gamma, beta, w1, b1, wf1, bf1, wf2, bf2, wp, bp = raw
    x = x.astype(jnp.float32)
    for l in range(E_LAYERS):
        res1 = x
        xn = _batchnorm_btc(x, gamma[l], beta[l])
        x = _gelu_ref(jnp.einsum("tu,buc->btc", w1[l], xn) + b1[l][None]) + res1
        if FAC_C:
            res2 = x
            xn = _batchnorm_btc(x, gamma[l], beta[l])
            h = _gelu_ref(jnp.einsum("btd,cd->btc", xn, wf1[l]) + bf1[l][None, None, :])
            x = jnp.einsum("btd,cd->btc", h, wf2[l]) + bf2[l][None, None, :] + res2
    return jnp.einsum("pt,btc->bpc", wp, x) + bp[None]


if __name__ == "__main__":
    key = jax.random.PRNGKey(0)
    kx, kp = jax.random.split(key)
    x_enc = jax.random.normal(kx, (B, SEQ_LEN, ENC_IN), jnp.float32)
    raw = init_raw_params(kp)
    packed = pack_params(raw, B)

    out = jax.block_until_ready(tsmixer_forward(x_enc, packed))

    ref = reference_forward(x_enc, raw)
    assert out.shape == (B, PRED_LEN, ENC_IN), out.shape
    max_err = float(jnp.max(jnp.abs(out - ref)))
    assert max_err < 1e-3, f"kernel mismatch vs reference: max|diff|={max_err}"
    print("KERNEL_OK")
</pallas_src>

<mosaic_0001>
module attributes {stable_mosaic.version = 11 : i64} {
  func.func @_tsmixer_kernel(%arg0: memref<16x16x8xf32, #tpu.memory_space<vmem>>, %arg1: memref<40x16xf32, #tpu.memory_space<vmem>>, %arg2: memref<2x2x128x128xf32, #tpu.memory_space<vmem>>, %arg3: memref<168x128xf32, #tpu.memory_space<vmem>>, %arg4: memref<16x8x8xf32, #tpu.memory_space<vmem>>, %arg5: memref<16x128xf32, #tpu.memory_space<vmem>>) attributes {dimension_semantics = [], scalar_prefetch = 0 : i64, scratch_operands = 1 : i64, tpu.core_type = #tpu.core_type<tc>} {
    %c0 = arith.constant 0 : index
    %c0_0 = arith.constant 0 : index
    %c0_1 = arith.constant 0 : index
    %0 = vector.load %arg0[%c0, %c0_0, %c0_1] : memref<16x16x8xf32, #tpu.memory_space<vmem>>, vector<1x16x8xf32>
    %1 = vector.shape_cast %0 : vector<1x16x8xf32> to vector<16x8xf32>
    %c0_2 = arith.constant 0 : index
    %c0_3 = arith.constant 0 : index
    %2 = vector.load %arg5[%c0_2, %c0_3] : memref<16x128xf32, #tpu.memory_space<vmem>>, vector<16x8xf32>
    tpu.vector_store %arg5[%c0_2, %c0_3], %1 {strides = array<i32>} : memref<16x128xf32, #tpu.memory_space<vmem>>, vector<16x8xf32>,
    %c1 = arith.constant 1 : index
    %c0_4 = arith.constant 0 : index
    %c0_5 = arith.constant 0 : index
    %3 = vector.load %arg0[%c1, %c0_4, %c0_5] : memref<16x16x8xf32, #tpu.memory_space<vmem>>, vector<1x16x8xf32>
    %4 = vector.shape_cast %3 : vector<1x16x8xf32> to vector<16x8xf32>
    %c0_6 = arith.constant 0 : index
    %c8 = arith.constant 8 : index
    %5 = vector.load %arg5[%c0_6, %c8] : memref<16x128xf32, #tpu.memory_space<vmem>>, vector<16x8xf32>
    tpu.vector_store %arg5[%c0_6, %c8], %4 {strides = array<i32>} : memref<16x128xf32, #tpu.memory_space<vmem>>, vector<16x8xf32>,
    %c2 = arith.constant 2 : index
    %c0_7 = arith.constant 0 : index
    %c0_8 = arith.constant 0 : index
    %6 = vector.load %arg0[%c2, %c0_7, %c0_8] : memref<16x16x8xf32, #tpu.memory_space<vmem>>, vector<1x16x8xf32>
    %7 = vector.shape_cast %6 : vector<1x16x8xf32> to vector<16x8xf32>
    %c0_9 = arith.constant 0 : index
    %c16 = arith.constant 16 : index
    %8 = vector.load %arg5[%c0_9, %c16] : memref<16x128xf32, #tpu.memory_space<vmem>>, vector<16x8xf32>
    tpu.vector_store %arg5[%c0_9, %c16], %7 {strides = array<i32>} : memref<16x128xf32, #tpu.memory_space<vmem>>, vector<16x8xf32>,
    %c3 = arith.constant 3 : index
    %c0_10 = arith.constant 0 : index
    %c0_11 = arith.constant 0 : index
    %9 = vector.load %arg0[%c3, %c0_10, %c0_11] : memref<16x16x8xf32, #tpu.memory_space<vmem>>, vector<1x16x8xf32>
    %10 = vector.shape_cast %9 : vector<1x16x8xf32> to vector<16x8xf32>
    %c0_12 = arith.constant 0 : index
    %c24 = arith.constant 24 : index
    %11 = vector.load %arg5[%c0_12, %c24] : memref<16x128xf32, #tpu.memory_space<vmem>>, vector<16x8xf32>
    tpu.vector_store %arg5[%c0_12, %c24], %10 {strides = array<i32>} : memref<16x128xf32, #tpu.memory_space<vmem>>, vector<16x8xf32>,
    %c4 = arith.constant 4 : index
    %c0_13 = arith.constant 0 : index
    %c0_14 = arith.constant 0 : index
    %12 = vector.load %arg0[%c4, %c0_13, %c0_14] : memref<16x16x8xf32, #tpu.memory_space<vmem>>, vector<1x16x8xf32>
    %13 = vector.shape_cast %12 : vector<1x16x8xf32> to vector<16x8xf32>
    %c0_15 = arith.constant 0 : index
    %c32 = arith.constant 32 : index
    %14 = vector.load %arg5[%c0_15, %c32] : memref<16x128xf32, #tpu.memory_space<vmem>>, vector<16x8xf32>
    tpu.vector_store %arg5[%c0_15, %c32], %13 {strides = array<i32>} : memref<16x128xf32, #tpu.memory_space<vmem>>, vector<16x8xf32>,
    %c5 = arith.constant 5 : index
    %c0_16 = arith.constant 0 : index
    %c0_17 = arith.constant 0 : index
    %15 = vector.load %arg0[%c5, %c0_16, %c0_17] : memref<16x16x8xf32, #tpu.memory_space<vmem>>, vector<1x16x8xf32>
    %16 = vector.shape_cast %15 : vector<1x16x8xf32> to vector<16x8xf32>
    %c0_18 = arith.constant 0 : index
    %c40 = arith.constant 40 : index
    %17 = vector.load %arg5[%c0_18, %c40] : memref<16x128xf32, #tpu.memory_space<vmem>>, vector<16x8xf32>
    tpu.vector_store %arg5[%c0_18, %c40], %16 {strides = array<i32>} : memref<16x128xf32, #tpu.memory_space<vmem>>, vector<16x8xf32>,
    %c6 = arith.constant 6 : index
    %c0_19 = arith.constant 0 : index
    %c0_20 = arith.constant 0 : index
    %18 = vector.load %arg0[%c6, %c0_19, %c0_20] : memref<16x16x8xf32, #tpu.memory_space<vmem>>, vector<1x16x8xf32>
    %19 = vector.shape_cast %18 : vector<1x16x8xf32> to vector<16x8xf32>
    %c0_21 = arith.constant 0 : index
    %c48 = arith.constant 48 : index
    %20 = vector.load %arg5[%c0_21, %c48] : memref<16x128xf32, #tpu.memory_space<vmem>>, vector<16x8xf32>
    tpu.vector_store %arg5[%c0_21, %c48], %19 {strides = array<i32>} : memref<16x128xf32, #tpu.memory_space<vmem>>, vector<16x8xf32>,
    %c7 = arith.constant 7 : index
    %c0_22 = arith.constant 0 : index
    %c0_23 = arith.constant 0 : index
    %21 = vector.load %arg0[%c7, %c0_22, %c0_23] : memref<16x16x8xf32, #tpu.memory_space<vmem>>, vector<1x16x8xf32>
    %22 = vector.shape_cast %21 : vector<1x16x8xf32> to vector<16x8xf32>
    %c0_24 = arith.constant 0 : index
    %c56 = arith.constant 56 : index
    %23 = vector.load %arg5[%c0_24, %c56] : memref<16x128xf32, #tpu.memory_space<vmem>>, vector<16x8xf32>
    tpu.vector_store %arg5[%c0_24, %c56], %22 {strides = array<i32>} : memref<16x128xf32, #tpu.memory_space<vmem>>, vector<16x8xf32>,
    %c8_25 = arith.constant 8 : index
    %c0_26 = arith.constant 0 : index
    %c0_27 = arith.constant 0 : index
    %24 = vector.load %arg0[%c8_25, %c0_26, %c0_27] : memref<16x16x8xf32, #tpu.memory_space<vmem>>, vector<1x16x8xf32>
    %25 = vector.shape_cast %24 : vector<1x16x8xf32> to vector<16x8xf32>
    %c0_28 = arith.constant 0 : index
    %c64 = arith.constant 64 : index
    %26 = vector.load %arg5[%c0_28, %c64] : memref<16x128xf32, #tpu.memory_space<vmem>>, vector<16x8xf32>
    tpu.vector_store %arg5[%c0_28, %c64], %25 {strides = array<i32>} : memref<16x128xf32, #tpu.memory_space<vmem>>, vector<16x8xf32>,
    %c9 = arith.constant 9 : index
    %c0_29 = arith.constant 0 : index
    %c0_30 = arith.constant 0 : index
    %27 = vector.load %arg0[%c9, %c0_29, %c0_30] : memref<16x16x8xf32, #tpu.memory_space<vmem>>, vector<1x16x8xf32>
    %28 = vector.shape_cast %27 : vector<1x16x8xf32> to vector<16x8xf32>
    %c0_31 = arith.constant 0 : index
    %c72 = arith.constant 72 : index
    %29 = vector.load %arg5[%c0_31, %c72] : memref<16x128xf32, #tpu.memory_space<vmem>>, vector<16x8xf32>
    tpu.vector_store %arg5[%c0_31, %c72], %28 {strides = array<i32>} : memref<16x128xf32, #tpu.memory_space<vmem>>, vector<16x8xf32>,
    %c10 = arith.constant 10 : index
    %c0_32 = arith.constant 0 : index
    %c0_33 = arith.constant 0 : index
    %30 = vector.load %arg0[%c10, %c0_32, %c0_33] : memref<16x16x8xf32, #tpu.memory_space<vmem>>, vector<1x16x8xf32>
    %31 = vector.shape_cast %30 : vector<1x16x8xf32> to vector<16x8xf32>
    %c0_34 = arith.constant 0 : index
    %c80 = arith.constant 80 : index
    %32 = vector.load %arg5[%c0_34, %c80] : memref<16x128xf32, #tpu.memory_space<vmem>>, vector<16x8xf32>
    tpu.vector_store %arg5[%c0_34, %c80], %31 {strides = array<i32>} : memref<16x128xf32, #tpu.memory_space<vmem>>, vector<16x8xf32>,
    %c11 = arith.constant 11 : index
    %c0_35 = arith.constant 0 : index
    %c0_36 = arith.constant 0 : index
    %33 = vector.load %arg0[%c11, %c0_35, %c0_36] : memref<16x16x8xf32, #tpu.memory_space<vmem>>, vector<1x16x8xf32>
    %34 = vector.shape_cast %33 : vector<1x16x8xf32> to vector<16x8xf32>
    %c0_37 = arith.constant 0 : index
    %c88 = arith.constant 88 : index
    %35 = vector.load %arg5[%c0_37, %c88] : memref<16x128xf32, #tpu.memory_space<vmem>>, vector<16x8xf32>
    tpu.vector_store %arg5[%c0_37, %c88], %34 {strides = array<i32>} : memref<16x128xf32, #tpu.memory_space<vmem>>, vector<16x8xf32>,
    %c12 = arith.constant 12 : index
    %c0_38 = arith.constant 0 : index
    %c0_39 = arith.constant 0 : index
    %36 = vector.load %arg0[%c12, %c0_38, %c0_39] : memref<16x16x8xf32, #tpu.memory_space<vmem>>, vector<1x16x8xf32>
    %37 = vector.shape_cast %36 : vector<1x16x8xf32> to vector<16x8xf32>
    %c0_40 = arith.constant 0 : index
    %c96 = arith.constant 96 : index
    %38 = vector.load %arg5[%c0_40, %c96] : memref<16x128xf32, #tpu.memory_space<vmem>>, vector<16x8xf32>
    tpu.vector_store %arg5[%c0_40, %c96], %37 {strides = array<i32>} : memref<16x128xf32, #tpu.memory_space<vmem>>, vector<16x8xf32>,
    %c13 = arith.constant 13 : index
    %c0_41 = arith.constant 0 : index
    %c0_42 = arith.constant 0 : index
    %39 = vector.load %arg0[%c13, %c0_41, %c0_42] : memref<16x16x8xf32, #tpu.memory_space<vmem>>, vector<1x16x8xf32>
    %40 = vector.shape_cast %39 : vector<1x16x8xf32> to vector<16x8xf32>
    %c0_43 = arith.constant 0 : index
    %c104 = arith.constant 104 : index
    %41 = vector.load %arg5[%c0_43, %c104] : memref<16x128xf32, #tpu.memory_space<vmem>>, vector<16x8xf32>
    tpu.vector_store %arg5[%c0_43, %c104], %40 {strides = array<i32>} : memref<16x128xf32, #tpu.memory_space<vmem>>, vector<16x8xf32>,
    %c14 = arith.constant 14 : index
    %c0_44 = arith.constant 0 : index
    %c0_45 = arith.constant 0 : index
    %42 = vector.load %arg0[%c14, %c0_44, %c0_45] : memref<16x16x8xf32, #tpu.memory_space<vmem>>, vector<1x16x8xf32>
    %43 = vector.shape_cast %42 : vector<1x16x8xf32> to vector<16x8xf32>
    %c0_46 = arith.constant 0 : index
    %c112 = arith.constant 112 : index
    %44 = vector.load %arg5[%c0_46, %c112] : memref<16x128xf32, #tpu.memory_space<vmem>>, vector<16x8xf32>
    tpu.vector_store %arg5[%c0_46, %c112], %43 {strides = array<i32>} : memref<16x128xf32, #tpu.memory_space<vmem>>, vector<16x8xf32>,
    %c15 = arith.constant 15 : index
    %c0_47 = arith.constant 0 : index
    %c0_48 = arith.constant 0 : index
    %45 = vector.load %arg0[%c15, %c0_47, %c0_48] : memref<16x16x8xf32, #tpu.memory_space<vmem>>, vector<1x16x8xf32>
    %46 = vector.shape_cast %45 : vector<1x16x8xf32> to vector<16x8xf32>
    %c0_49 = arith.constant 0 : index
    %c120 = arith.constant 120 : index
    %47 = vector.load %arg5[%c0_49, %c120] : memref<16x128xf32, #tpu.memory_space<vmem>>, vector<16x8xf32>
    tpu.vector_store %arg5[%c0_49, %c120], %46 {strides = array<i32>} : memref<16x128xf32, #tpu.memory_space<vmem>>, vector<16x8xf32>,
    %c0_50 = arith.constant 0 : index
    %c0_51 = arith.constant 0 : index
    %48 = vector.load %arg5[%c0_50, %c0_51] : memref<16x128xf32, #tpu.memory_space<vmem>>, vector<16x128xf32>
    %c0_52 = arith.constant 0 : index
    %c0_53 = arith.constant 0 : index
    %49 = vector.load %arg1[%c0_52, %c0_53] : memref<40x16xf32, #tpu.memory_space<vmem>>, vector<16x16xf32>
    %c0_54 = arith.constant 0 : index
    %c0_55 = arith.constant 0 : index
    %50 = vector.load %arg3[%c0_54, %c0_55] : memref<168x128xf32, #tpu.memory_space<vmem>>, vector<16x128xf32>
    %c16_56 = arith.constant 16 : index
    %c0_57 = arith.constant 0 : index
    %51 = vector.load %arg3[%c16_56, %c0_57] : memref<168x128xf32, #tpu.memory_space<vmem>>, vector<16x128xf32>
    %c32_58 = arith.constant 32 : index
    %c0_59 = arith.constant 0 : index
    %52 = vector.load %arg3[%c32_58, %c0_59] : memref<168x128xf32, #tpu.memory_space<vmem>>, vector<16x128xf32>
    %c48_60 = arith.constant 48 : index
    %c0_61 = arith.constant 0 : index
    %53 = vector.load %arg3[%c48_60, %c0_61] : memref<168x128xf32, #tpu.memory_space<vmem>>, vector<16x128xf32>
    %c64_62 = arith.constant 64 : index
    %c0_63 = arith.constant 0 : index
    %54 = vector.load %arg3[%c64_62, %c0_63] : memref<168x128xf32, #tpu.memory_space<vmem>>, vector<16x128xf32>
    %cst = arith.constant dense<0.000000e+00> : vector<16xf32>
    %55 = vector.multi_reduction <add>, %48, %cst [1] : vector<16x128xf32> to vector<16xf32>
    %56 = vector.shape_cast %55 : vector<16xf32> to vector<16x1xf32>
    %57 = arith.mulf %48, %48 : vector<16x128xf32>
    %cst_64 = arith.constant dense<0.000000e+00> : vector<16xf32>
    %58 = vector.multi_reduction <add>, %57, %cst_64 [1] : vector<16x128xf32> to vector<16xf32>
    %59 = vector.shape_cast %58 : vector<16xf32> to vector<16x1xf32>
    %cst_65 = arith.constant 7.812500e-03 : f32
    %60 = vector.broadcast %cst_65 : f32 to vector<16x1xf32>
    %61 = arith.mulf %56, %60 : vector<16x1xf32>
    %cst_66 = arith.constant 7.812500e-03 : f32
    %62 = vector.broadcast %cst_66 : f32 to vector<16x1xf32>
    %63 = arith.mulf %59, %62 : vector<16x1xf32>
    %64 = arith.mulf %61, %61 : vector<16x1xf32>
    %65 = arith.subf %63, %64 : vector<16x1xf32>
    %cst_67 = arith.constant 0.000000e+00 : f32
    %66 = vector.broadcast %cst_67 : f32 to vector<16x1xf32>
    %67 = arith.maximumf %65, %66 : vector<16x1xf32>
    %cst_68 = arith.constant 9.99999974E-6 : f32
    %68 = vector.broadcast %cst_68 : f32 to vector<16x1xf32>
    %69 = arith.addf %67, %68 : vector<16x1xf32>
    %70 = math.rsqrt %69 : vector<16x1xf32>
    %71 = vector.broadcast %61 : vector<16x1xf32> to vector<16x128xf32>
    %72 = arith.subf %48, %71 : vector<16x128xf32>
    %73 = vector.broadcast %70 : vector<16x1xf32> to vector<16x128xf32>
    %74 = arith.mulf %72, %73 : vector<16x128xf32>
    %cst_69 = arith.constant dense<0.000000e+00> : vector<16x128xf32>
    %75 = tpu.matmul %49, %74, %cst_69 {dimension_numbers = #tpu.dot_dimension_numbers<[1], [0], [0], [1], [0, 0, 1, 1], [], []>} : vector<16x16xf32>, vector<16x128xf32>, vector<16x128xf32> -> vector<16x128xf32>
    %76 = arith.addf %75, %50 : vector<16x128xf32>
    %cst_70 = arith.constant 5.000000e-01 : f32
    %77 = vector.broadcast %cst_70 : f32 to vector<16x128xf32>
    %78 = arith.mulf %77, %76 : vector<16x128xf32>
    %cst_71 = arith.constant 0.707106769 : f32
    %79 = vector.broadcast %cst_71 : f32 to vector<16x128xf32>
    %80 = arith.mulf %76, %79 : vector<16x128xf32>
    %81 = math.absf %80 : vector<16x128xf32>
    %cst_72 = arith.constant 0.327591091 : f32
    %82 = vector.broadcast %cst_72 : f32 to vector<16x128xf32>
    %83 = arith.mulf %82, %81 : vector<16x128xf32>
    %cst_73 = arith.constant 1.000000e+00 : f32
    %84 = vector.broadcast %cst_73 : f32 to vector<16x128xf32>
    %85 = arith.addf %84, %83 : vector<16x128xf32>
    %86 = tpu.reciprocal %85 {approx = true} : vector<16x128xf32> -> vector<16x128xf32>
    %87 = arith.mulf %85, %86 : vector<16x128xf32>
    %cst_74 = arith.constant 2.000000e+00 : f32
    %88 = vector.broadcast %cst_74 : f32 to vector<16x128xf32>
    %89 = arith.subf %88, %87 : vector<16x128xf32>
    %90 = arith.mulf %86, %89 : vector<16x128xf32>
    %cst_75 = arith.constant 1.06140542 : f32
    %91 = vector.broadcast %cst_75 : f32 to vector<16x128xf32>
    %92 = arith.mulf %91, %90 : vector<16x128xf32>
    %cst_76 = arith.constant -1.45315206 : f32
    %93 = vector.broadcast %cst_76 : f32 to vector<16x128xf32>
    %94 = arith.addf %92, %93 : vector<16x128xf32>
    %95 = arith.mulf %94, %90 : vector<16x128xf32>
    %cst_77 = arith.constant 1.42141378 : f32
    %96 = vector.broadcast %cst_77 : f32 to vector<16x128xf32>
    %97 = arith.addf %95, %96 : vector<16x128xf32>
    %98 = arith.mulf %97, %90 : vector<16x128xf32>
    %cst_78 = arith.constant -0.284496725 : f32
    %99 = vector.broadcast %cst_78 : f32 to vector<16x128xf32>
    %100 = arith.addf %98, %99 : vector<16x128xf32>
    %101 = arith.mulf %100, %90 : vector<16x128xf32>
    %cst_79 = arith.constant 0.254829586 : f32
    %102 = vector.broadcast %cst_79 : f32 to vector<16x128xf32>
    %103 = arith.addf %101, %102 : vector<16x128xf32>
    %104 = arith.mulf %103, %90 : vector<16x128xf32>
    %cst_80 = arith.constant 0.000000e+00 : f32
    %105 = vector.broadcast %cst_80 : f32 to vector<16x128xf32>
    %106 = arith.subf %105, %81 : vector<16x128xf32>
    %107 = arith.mulf %106, %81 : vector<16x128xf32>
    %108 = math.exp %107 : vector<16x128xf32>
    %109 = arith.mulf %104, %108 : vector<16x128xf32>
    %cst_81 = arith.constant 1.000000e+00 : f32
    %110 = vector.broadcast %cst_81 : f32 to vector<16x128xf32>
    %111 = arith.subf %110, %109 : vector<16x128xf32>
    %cst_82 = arith.constant 0.000000e+00 : f32
    %112 = vector.broadcast %cst_82 : f32 to vector<16x128xf32>
    %113 = arith.cmpf olt, %80, %112 : vector<16x128xf32>
    %cst_83 = arith.constant 0.000000e+00 : f32
    %114 = vector.broadcast %cst_83 : f32 to vector<16x128xf32>
    %115 = arith.subf %114, %111 : vector<16x128xf32>
    %116 = arith.select %113, %115, %111 : vector<16x128xi1>, vector<16x128xf32>
    %cst_84 = arith.constant 1.000000e+00 : f32
    %117 = vector.broadcast %cst_84 : f32 to vector<16x128xf32>
    %118 = arith.addf %117, %116 : vector<16x128xf32>
    %119 = arith.mulf %78, %118 : vector<16x128xf32>
    %120 = arith.addf %119, %48 : vector<16x128xf32>
    %c0_85 = arith.constant 0 : index
    %c0_86 = arith.constant 0 : index
    %c0_87 = arith.constant 0 : index
    %c0_88 = arith.constant 0 : index
    %121 = vector.load %arg2[%c0_85, %c0_86, %c0_87, %c0_88] : memref<2x2x128x128xf32, #tpu.memory_space<vmem>>, vector<1x1x128x128xf32>
    %122 = vector.shape_cast %121 : vector<1x1x128x128xf32> to vector<128x128xf32>
    %c0_89 = arith.constant 0 : index
    %c1_90 = arith.constant 1 : index
    %c0_91 = arith.constant 0 : index
    %c0_92 = arith.constant 0 : index
    %123 = vector.load %arg2[%c0_89, %c1_90, %c0_91, %c0_92] : memref<2x2x128x128xf32, #tpu.memory_space<vmem>>, vector<1x1x128x128xf32>
    %124 = vector.shape_cast %123 : vector<1x1x128x128xf32> to vector<128x128xf32>
    %cst_93 = arith.constant dense<0.000000e+00> : vector<16xf32>
    %125 = vector.multi_reduction <add>, %120, %cst_93 [1] : vector<16x128xf32> to vector<16xf32>
    %126 = vector.shape_cast %125 : vector<16xf32> to vector<16x1xf32>
    %127 = arith.mulf %120, %120 : vector<16x128xf32>
    %cst_94 = arith.constant dense<0.000000e+00> : vector<16xf32>
    %128 = vector.multi_reduction <add>, %127, %cst_94 [1] : vector<16x128xf32> to vector<16xf32>
    %129 = vector.shape_cast %128 : vector<16xf32> to vector<16x1xf32>
    %cst_95 = arith.constant 7.812500e-03 : f32
    %130 = vector.broadcast %cst_95 : f32 to vector<16x1xf32>
    %131 = arith.mulf %126, %130 : vector<16x1xf32>
    %cst_96 = arith.constant 7.812500e-03 : f32
    %132 = vector.broadcast %cst_96 : f32 to vector<16x1xf32>
    %133 = arith.mulf %129, %132 : vector<16x1xf32>
    %134 = arith.mulf %131, %131 : vector<16x1xf32>
    %135 = arith.subf %133, %134 : vector<16x1xf32>
    %cst_97 = arith.constant 0.000000e+00 : f32
    %136 = vector.broadcast %cst_97 : f32 to vector<16x1xf32>
    %137 = arith.maximumf %135, %136 : vector<16x1xf32>
    %cst_98 = arith.constant 9.99999974E-6 : f32
    %138 = vector.broadcast %cst_98 : f32 to vector<16x1xf32>
    %139 = arith.addf %137, %138 : vector<16x1xf32>
    %140 = math.rsqrt %139 : vector<16x1xf32>
    %141 = vector.broadcast %131 : vector<16x1xf32> to vector<16x128xf32>
    %142 = arith.subf %120, %141 : vector<16x128xf32>
    %143 = vector.broadcast %140 : vector<16x1xf32> to vector<16x128xf32>
    %144 = arith.mulf %142, %143 : vector<16x128xf32>
    %145 = arith.mulf %144, %51 : vector<16x128xf32>
    %146 = arith.addf %145, %52 : vector<16x128xf32>
    %cst_99 = arith.constant dense<0.000000e+00> : vector<16x128xf32>
    %147 = tpu.matmul %146, %122, %cst_99 {dimension_numbers = #tpu.dot_dimension_numbers<[1], [0], [0], [1], [0, 0, 1, 1], [], []>} : vector<16x128xf32>, vector<128x128xf32>, vector<16x128xf32> -> vector<16x128xf32>
    %148 = arith.addf %147, %53 : vector<16x128xf32>
    %cst_100 = arith.constant 5.000000e-01 : f32
    %149 = vector.broadcast %cst_100 : f32 to vector<16x128xf32>
    %150 = arith.mulf %149, %148 : vector<16x128xf32>
    %cst_101 = arith.constant 0.707106769 : f32
    %151 = vector.broadcast %cst_101 : f32 to vector<16x128xf32>
    %152 = arith.mulf %148, %151 : vector<16x128xf32>
    %153 = math.absf %152 : vector<16x128xf32>
    %cst_102 = arith.constant 0.327591091 : f32
    %154 = vector.broadcast %cst_102 : f32 to vector<16x128xf32>
    %155 = arith.mulf %154, %153 : vector<16x128xf32>
    %cst_103 = arith.constant 1.000000e+00 : f32
    %156 = vector.broadcast %cst_103 : f32 to vector<16x128xf32>
    %157 = arith.addf %156, %155 : vector<16x128xf32>
    %158 = tpu.reciprocal %157 {approx = true} : vector<16x128xf32> -> vector<16x128xf32>
    %159 = arith.mulf %157, %158 : vector<16x128xf32>
    %cst_104 = arith.constant 2.000000e+00 : f32
    %160 = vector.broadcast %cst_104 : f32 to vector<16x128xf32>
    %161 = arith.subf %160, %159 : vector<16x128xf32>
    %162 = arith.mulf %158, %161 : vector<16x128xf32>
    %cst_105 = arith.constant 1.06140542 : f32
    %163 = vector.broadcast %cst_105 : f32 to vector<16x128xf32>
    %164 = arith.mulf %163, %162 : vector<16x128xf32>
    %cst_106 = arith.constant -1.45315206 : f32
    %165 = vector.broadcast %cst_106 : f32 to vector<16x128xf32>
    %166 = arith.addf %164, %165 : vector<16x128xf32>
    %167 = arith.mulf %166, %162 : vector<16x128xf32>
    %cst_107 = arith.constant 1.42141378 : f32
    %168 = vector.broadcast %cst_107 : f32 to vector<16x128xf32>
    %169 = arith.addf %167, %168 : vector<16x128xf32>
    %170 = arith.mulf %169, %162 : vector<16x128xf32>
    %cst_108 = arith.constant -0.284496725 : f32
    %171 = vector.broadcast %cst_108 : f32 to vector<16x128xf32>
    %172 = arith.addf %170, %171 : vector<16x128xf32>
    %173 = arith.mulf %172, %162 : vector<16x128xf32>
    %cst_109 = arith.constant 0.254829586 : f32
    %174 = vector.broadcast %cst_109 : f32 to vector<16x128xf32>
    %175 = arith.addf %173, %174 : vector<16x128xf32>
    %176 = arith.mulf %175, %162 : vector<16x128xf32>
    %cst_110 = arith.constant 0.000000e+00 : f32
    %177 = vector.broadcast %cst_110 : f32 to vector<16x128xf32>
    %178 = arith.subf %177, %153 : vector<16x128xf32>
    %179 = arith.mulf %178, %153 : vector<16x128xf32>
    %180 = math.exp %179 : vector<16x128xf32>
    %181 = arith.mulf %176, %180 : vector<16x128xf32>
    %cst_111 = arith.constant 1.000000e+00 : f32
    %182 = vector.broadcast %cst_111 : f32 to vector<16x128xf32>
    %183 = arith.subf %182, %181 : vector<16x128xf32>
    %cst_112 = arith.constant 0.000000e+00 : f32
    %184 = vector.broadcast %cst_112 : f32 to vector<16x128xf32>
    %185 = arith.cmpf olt, %152, %184 : vector<16x128xf32>
    %cst_113 = arith.constant 0.000000e+00 : f32
    %186 = vector.broadcast %cst_113 : f32 to vector<16x128xf32>
    %187 = arith.subf %186, %183 : vector<16x128xf32>
    %188 = arith.select %185, %187, %183 : vector<16x128xi1>, vector<16x128xf32>
    %cst_114 = arith.constant 1.000000e+00 : f32
    %189 = vector.broadcast %cst_114 : f32 to vector<16x128xf32>
    %190 = arith.addf %189, %188 : vector<16x128xf32>
    %191 = arith.mulf %150, %190 : vector<16x128xf32>
    %cst_115 = arith.constant dense<0.000000e+00> : vector<16x128xf32>
    %192 = tpu.matmul %191, %124, %cst_115 {dimension_numbers = #tpu.dot_dimension_numbers<[1], [0], [0], [1], [0, 0, 1, 1], [], []>} : vector<16x128xf32>, vector<128x128xf32>, vector<16x128xf32> -> vector<16x128xf32>
    %193 = arith.addf %192, %54 : vector<16x128xf32>
    %194 = arith.addf %193, %120 : vector<16x128xf32>
    %c16_116 = arith.constant 16 : index
    %c0_117 = arith.constant 0 : index
    %195 = vector.load %arg1[%c16_116, %c0_117] : memref<40x16xf32, #tpu.memory_space<vmem>>, vector<16x16xf32>
    %c80_118 = arith.constant 80 : index
    %c0_119 = arith.constant 0 : index
    %196 = vector.load %arg3[%c80_118, %c0_119] : memref<168x128xf32, #tpu.memory_space<vmem>>, vector<16x128xf32>
    %c96_120 = arith.constant 96 : index
    %c0_121 = arith.constant 0 : index
    %197 = vector.load %arg3[%c96_120, %c0_121] : memref<168x128xf32, #tpu.memory_space<vmem>>, vector<16x128xf32>
    %c112_122 = arith.constant 112 : index
    %c0_123 = arith.constant 0 : index
    %198 = vector.load %arg3[%c112_122, %c0_123] : memref<168x128xf32, #tpu.memory_space<vmem>>, vector<16x128xf32>
    %c128 = arith.constant 128 : index
    %c0_124 = arith.constant 0 : index
    %199 = vector.load %arg3[%c128, %c0_124] : memref<168x128xf32, #tpu.memory_space<vmem>>, vector<16x128xf32>
    %c144 = arith.constant 144 : index
    %c0_125 = arith.constant 0 : index
    %200 = vector.load %arg3[%c144, %c0_125] : memref<168x128xf32, #tpu.memory_space<vmem>>, vector<16x128xf32>
    %cst_126 = arith.constant dense<0.000000e+00> : vector<16xf32>
    %201 = vector.multi_reduction <add>, %194, %cst_126 [1] : vector<16x128xf32> to vector<16xf32>
    %202 = vector.shape_cast %201 : vector<16xf32> to vector<16x1xf32>
    %203 = arith.mulf %194, %194 : vector<16x128xf32>
    %cst_127 = arith.constant dense<0.000000e+00> : vector<16xf32>
    %204 = vector.multi_reduction <add>, %203, %cst_127 [1] : vector<16x128xf32> to vector<16xf32>
    %205 = vector.shape_cast %204 : vector<16xf32> to vector<16x1xf32>
    %cst_128 = arith.constant 7.812500e-03 : f32
    %206 = vector.broadcast %cst_128 : f32 to vector<16x1xf32>
    %207 = arith.mulf %202, %206 : vector<16x1xf32>
    %cst_129 = arith.constant 7.812500e-03 : f32
    %208 = vector.broadcast %cst_129 : f32 to vector<16x1xf32>
    %209 = arith.mulf %205, %208 : vector<16x1xf32>
    %210 = arith.mulf %207, %207 : vector<16x1xf32>
    %211 = arith.subf %209, %210 : vector<16x1xf32>
    %cst_130 = arith.constant 0.000000e+00 : f32
    %212 = vector.broadcast %cst_130 : f32 to vector<16x1xf32>
    %213 = arith.maximumf %211, %212 : vector<16x1xf32>
    %cst_131 = arith.constant 9.99999974E-6 : f32
    %214 = vector.broadcast %cst_131 : f32 to vector<16x1xf32>
    %215 = arith.addf %213, %214 : vector<16x1xf32>
    %216 = math.rsqrt %215 : vector<16x1xf32>
    %217 = vector.broadcast %207 : vector<16x1xf32> to vector<16x128xf32>
    %218 = arith.subf %194, %217 : vector<16x128xf32>
    %219 = vector.broadcast %216 : vector<16x1xf32> to vector<16x128xf32>
    %220 = arith.mulf %218, %219 : vector<16x128xf32>
    %cst_132 = arith.constant dense<0.000000e+00> : vector<16x128xf32>
    %221 = tpu.matmul %195, %220, %cst_132 {dimension_numbers = #tpu.dot_dimension_numbers<[1], [0], [0], [1], [0, 0, 1, 1], [], []>} : vector<16x16xf32>, vector<16x128xf32>, vector<16x128xf32> -> vector<16x128xf32>
    %222 = arith.addf %221, %196 : vector<16x128xf32>
    %cst_133 = arith.constant 5.000000e-01 : f32
    %223 = vector.broadcast %cst_133 : f32 to vector<16x128xf32>
    %224 = arith.mulf %223, %222 : vector<16x128xf32>
    %cst_134 = arith.constant 0.707106769 : f32
    %225 = vector.broadcast %cst_134 : f32 to vector<16x128xf32>
    %226 = arith.mulf %222, %225 : vector<16x128xf32>
    %227 = math.absf %226 : vector<16x128xf32>
    %cst_135 = arith.constant 0.327591091 : f32
    %228 = vector.broadcast %cst_135 : f32 to vector<16x128xf32>
    %229 = arith.mulf %228, %227 : vector<16x128xf32>
    %cst_136 = arith.constant 1.000000e+00 : f32
    %230 = vector.broadcast %cst_136 : f32 to vector<16x128xf32>
    %231 = arith.addf %230, %229 : vector<16x128xf32>
    %232 = tpu.reciprocal %231 {approx = true} : vector<16x128xf32> -> vector<16x128xf32>
    %233 = arith.mulf %231, %232 : vector<16x128xf32>
    %cst_137 = arith.constant 2.000000e+00 : f32
    %234 = vector.broadcast %cst_137 : f32 to vector<16x128xf32>
    %235 = arith.subf %234, %233 : vector<16x128xf32>
    %236 = arith.mulf %232, %235 : vector<16x128xf32>
    %cst_138 = arith.constant 1.06140542 : f32
    %237 = vector.broadcast %cst_138 : f32 to vector<16x128xf32>
    %238 = arith.mulf %237, %236 : vector<16x128xf32>
    %cst_139 = arith.constant -1.45315206 : f32
    %239 = vector.broadcast %cst_139 : f32 to vector<16x128xf32>
    %240 = arith.addf %238, %239 : vector<16x128xf32>
    %241 = arith.mulf %240, %236 : vector<16x128xf32>
    %cst_140 = arith.constant 1.42141378 : f32
    %242 = vector.broadcast %cst_140 : f32 to vector<16x128xf32>
    %243 = arith.addf %241, %242 : vector<16x128xf32>
    %244 = arith.mulf %243, %236 : vector<16x128xf32>
    %cst_141 = arith.constant -0.284496725 : f32
    %245 = vector.broadcast %cst_141 : f32 to vector<16x128xf32>
    %246 = arith.addf %244, %245 : vector<16x128xf32>
    %247 = arith.mulf %246, %236 : vector<16x128xf32>
    %cst_142 = arith.constant 0.254829586 : f32
    %248 = vector.broadcast %cst_142 : f32 to vector<16x128xf32>
    %249 = arith.addf %247, %248 : vector<16x128xf32>
    %250 = arith.mulf %249, %236 : vector<16x128xf32>
    %cst_143 = arith.constant 0.000000e+00 : f32
    %251 = vector.broadcast %cst_143 : f32 to vector<16x128xf32>
    %252 = arith.subf %251, %227 : vector<16x128xf32>
    %253 = arith.mulf %252, %227 : vector<16x128xf32>
    %254 = math.exp %253 : vector<16x128xf32>
    %255 = arith.mulf %250, %254 : vector<16x128xf32>
    %cst_144 = arith.constant 1.000000e+00 : f32
    %256 = vector.broadcast %cst_144 : f32 to vector<16x128xf32>
    %257 = arith.subf %256, %255 : vector<16x128xf32>
    %cst_145 = arith.constant 0.000000e+00 : f32
    %258 = vector.broadcast %cst_145 : f32 to vector<16x128xf32>
    %259 = arith.cmpf olt, %226, %258 : vector<16x128xf32>
    %cst_146 = arith.constant 0.000000e+00 : f32
    %260 = vector.broadcast %cst_146 : f32 to vector<16x128xf32>
    %261 = arith.subf %260, %257 : vector<16x128xf32>
    %262 = arith.select %259, %261, %257 : vector<16x128xi1>, vector<16x128xf32>
    %cst_147 = arith.constant 1.000000e+00 : f32
    %263 = vector.broadcast %cst_147 : f32 to vector<16x128xf32>
    %264 = arith.addf %263, %262 : vector<16x128xf32>
    %265 = arith.mulf %224, %264 : vector<16x128xf32>
    %266 = arith.addf %265, %194 : vector<16x128xf32>
    %c1_148 = arith.constant 1 : index
    %c0_149 = arith.constant 0 : index
    %c0_150 = arith.constant 0 : index
    %c0_151 = arith.constant 0 : index
    %267 = vector.load %arg2[%c1_148, %c0_149, %c0_150, %c0_151] : memref<2x2x128x128xf32, #tpu.memory_space<vmem>>, vector<1x1x128x128xf32>
    %268 = vector.shape_cast %267 : vector<1x1x128x128xf32> to vector<128x128xf32>
    %c1_152 = arith.constant 1 : index
    %c1_153 = arith.constant 1 : index
    %c0_154 = arith.constant 0 : index
    %c0_155 = arith.constant 0 : index
    %269 = vector.load %arg2[%c1_152, %c1_153, %c0_154, %c0_155] : memref<2x2x128x128xf32, #tpu.memory_space<vmem>>, vector<1x1x128x128xf32>
    %270 = vector.shape_cast %269 : vector<1x1x128x128xf32> to vector<128x128xf32>
    %cst_156 = arith.constant dense<0.000000e+00> : vector<16xf32>
    %271 = vector.multi_reduction <add>, %266, %cst_156 [1] : vector<16x128xf32> to vector<16xf32>
    %272 = vector.shape_cast %271 : vector<16xf32> to vector<16x1xf32>
    %273 = arith.mulf %266, %266 : vector<16x128xf32>
    %cst_157 = arith.constant dense<0.000000e+00> : vector<16xf32>
    %274 = vector.multi_reduction <add>, %273, %cst_157 [1] : vector<16x128xf32> to vector<16xf32>
    %275 = vector.shape_cast %274 : vector<16xf32> to vector<16x1xf32>
    %cst_158 = arith.constant 7.812500e-03 : f32
    %276 = vector.broadcast %cst_158 : f32 to vector<16x1xf32>
    %277 = arith.mulf %272, %276 : vector<16x1xf32>
    %cst_159 = arith.constant 7.812500e-03 : f32
    %278 = vector.broadcast %cst_159 : f32 to vector<16x1xf32>
    %279 = arith.mulf %275, %278 : vector<16x1xf32>
    %280 = arith.mulf %277, %277 : vector<16x1xf32>
    %281 = arith.subf %279, %280 : vector<16x1xf32>
    %cst_160 = arith.constant 0.000000e+00 : f32
    %282 = vector.broadcast %cst_160 : f32 to vector<16x1xf32>
    %283 = arith.maximumf %281, %282 : vector<16x1xf32>
    %cst_161 = arith.constant 9.99999974E-6 : f32
    %284 = vector.broadcast %cst_161 : f32 to vector<16x1xf32>
    %285 = arith.addf %283, %284 : vector<16x1xf32>
    %286 = math.rsqrt %285 : vector<16x1xf32>
    %287 = vector.broadcast %277 : vector<16x1xf32> to vector<16x128xf32>
    %288 = arith.subf %266, %287 : vector<16x128xf32>
    %289 = vector.broadcast %286 : vector<16x1xf32> to vector<16x128xf32>
    %290 = arith.mulf %288, %289 : vector<16x128xf32>
    %291 = arith.mulf %290, %197 : vector<16x128xf32>
    %292 = arith.addf %291, %198 : vector<16x128xf32>
    %cst_162 = arith.constant dense<0.000000e+00> : vector<16x128xf32>
    %293 = tpu.matmul %292, %268, %cst_162 {dimension_numbers = #tpu.dot_dimension_numbers<[1], [0], [0], [1], [0, 0, 1, 1], [], []>} : vector<16x128xf32>, vector<128x128xf32>, vector<16x128xf32> -> vector<16x128xf32>
    %294 = arith.addf %293, %199 : vector<16x128xf32>
    %cst_163 = arith.constant 5.000000e-01 : f32
    %295 = vector.broadcast %cst_163 : f32 to vector<16x128xf32>
    %296 = arith.mulf %295, %294 : vector<16x128xf32>
    %cst_164 = arith.constant 0.707106769 : f32
    %297 = vector.broadcast %cst_164 : f32 to vector<16x128xf32>
    %298 = arith.mulf %294, %297 : vector<16x128xf32>
    %299 = math.absf %298 : vector<16x128xf32>
    %cst_165 = arith.constant 0.327591091 : f32
    %300 = vector.broadcast %cst_165 : f32 to vector<16x128xf32>
    %301 = arith.mulf %300, %299 : vector<16x128xf32>
    %cst_166 = arith.constant 1.000000e+00 : f32
    %302 = vector.broadcast %cst_166 : f32 to vector<16x128xf32>
    %303 = arith.addf %302, %301 : vector<16x128xf32>
    %304 = tpu.reciprocal %303 {approx = true} : vector<16x128xf32> -> vector<16x128xf32>
    %305 = arith.mulf %303, %304 : vector<16x128xf32>
    %cst_167 = arith.constant 2.000000e+00 : f32
    %306 = vector.broadcast %cst_167 : f32 to vector<16x128xf32>
    %307 = arith.subf %306, %305 : vector<16x128xf32>
    %308 = arith.mulf %304, %307 : vector<16x128xf32>
    %cst_168 = arith.constant 1.06140542 : f32
    %309 = vector.broadcast %cst_168 : f32 to vector<16x128xf32>
    %310 = arith.mulf %309, %308 : vector<16x128xf32>
    %cst_169 = arith.constant -1.45315206 : f32
    %311 = vector.broadcast %cst_169 : f32 to vector<16x128xf32>
    %312 = arith.addf %310, %311 : vector<16x128xf32>
    %313 = arith.mulf %312, %308 : vector<16x128xf32>
    %cst_170 = arith.constant 1.42141378 : f32
    %314 = vector.broadcast %cst_170 : f32 to vector<16x128xf32>
    %315 = arith.addf %313, %314 : vector<16x128xf32>
    %316 = arith.mulf %315, %308 : vector<16x128xf32>
    %cst_171 = arith.constant -0.284496725 : f32
    %317 = vector.broadcast %cst_171 : f32 to vector<16x128xf32>
    %318 = arith.addf %316, %317 : vector<16x128xf32>
    %319 = arith.mulf %318, %308 : vector<16x128xf32>
    %cst_172 = arith.constant 0.254829586 : f32
    %320 = vector.broadcast %cst_172 : f32 to vector<16x128xf32>
    %321 = arith.addf %319, %320 : vector<16x128xf32>
    %322 = arith.mulf %321, %308 : vector<16x128xf32>
    %cst_173 = arith.constant 0.000000e+00 : f32
    %323 = vector.broadcast %cst_173 : f32 to vector<16x128xf32>
    %324 = arith.subf %323, %299 : vector<16x128xf32>
    %325 = arith.mulf %324, %299 : vector<16x128xf32>
    %326 = math.exp %325 : vector<16x128xf32>
    %327 = arith.mulf %322, %326 : vector<16x128xf32>
    %cst_174 = arith.constant 1.000000e+00 : f32
    %328 = vector.broadcast %cst_174 : f32 to vector<16x128xf32>
    %329 = arith.subf %328, %327 : vector<16x128xf32>
    %cst_175 = arith.constant 0.000000e+00 : f32
    %330 = vector.broadcast %cst_175 : f32 to vector<16x128xf32>
    %331 = arith.cmpf olt, %298, %330 : vector<16x128xf32>
    %cst_176 = arith.constant 0.000000e+00 : f32
    %332 = vector.broadcast %cst_176 : f32 to vector<16x128xf32>
    %333 = arith.subf %332, %329 : vector<16x128xf32>
    %334 = arith.select %331, %333, %329 : vector<16x128xi1>, vector<16x128xf32>
    %cst_177 = arith.constant 1.000000e+00 : f32
    %335 = vector.broadcast %cst_177 : f32 to vector<16x128xf32>
    %336 = arith.addf %335, %334 : vector<16x128xf32>
    %337 = arith.mulf %296, %336 : vector<16x128xf32>
    %cst_178 = arith.constant dense<0.000000e+00> : vector<16x128xf32>
    %338 = tpu.matmul %337, %270, %cst_178 {dimension_numbers = #tpu.dot_dimension_numbers<[1], [0], [0], [1], [0, 0, 1, 1], [], []>} : vector<16x128xf32>, vector<128x128xf32>, vector<16x128xf32> -> vector<16x128xf32>
    %339 = arith.addf %338, %200 : vector<16x128xf32>
    %340 = arith.addf %339, %266 : vector<16x128xf32>
    %c32_179 = arith.constant 32 : index
    %c0_180 = arith.constant 0 : index
    %341 = vector.load %arg1[%c32_179, %c0_180] : memref<40x16xf32, #tpu.memory_space<vmem>>, vector<8x16xf32>
    %c160 = arith.constant 160 : index
    %c0_181 = arith.constant 0 : index
    %342 = vector.load %arg3[%c160, %c0_181] : memref<168x128xf32, #tpu.memory_space<vmem>>, vector<8x128xf32>
    %cst_182 = arith.constant dense<0.000000e+00> : vector<8x128xf32>
    %343 = tpu.matmul %341, %340, %cst_182 {dimension_numbers = #tpu.dot_dimension_numbers<[1], [0], [0], [1], [0, 0, 1, 1], [], []>} : vector<8x16xf32>, vector<16x128xf32>, vector<8x128xf32> -> vector<8x128xf32>
    %344 = arith.addf %343, %342 : vector<8x128xf32>
    %345 = vector.extract_strided_slice %344 {offsets = [0, 0], sizes = [8, 8], strides = [1, 1]} : vector<8x128xf32> to vector<8x8xf32>
    %c0_183 = arith.constant 0 : index
    %c0_184 = arith.constant 0 : index
    %c0_185 = arith.constant 0 : index
    %346 = vector.load %arg4[%c0_183, %c0_184, %c0_185] : memref<16x8x8xf32, #tpu.memory_space<vmem>>, vector<1x8x8xf32>
    %347 = vector.shape_cast %346 : vector<1x8x8xf32> to vector<8x8xf32>
    %348 = vector.shape_cast %345 : vector<8x8xf32> to vector<1x8x8xf32>
    tpu.vector_store %arg4[%c0_183, %c0_184, %c0_185], %348 {strides = array<i32>} : memref<16x8x8xf32, #tpu.memory_space<vmem>>, vector<1x8x8xf32>,
    %349 = vector.extract_strided_slice %344 {offsets = [0, 8], sizes = [8, 8], strides = [1, 1]} : vector<8x128xf32> to vector<8x8xf32>
    %c1_186 = arith.constant 1 : index
    %c0_187 = arith.constant 0 : index
    %c0_188 = arith.constant 0 : index
    %350 = vector.load %arg4[%c1_186, %c0_187, %c0_188] : memref<16x8x8xf32, #tpu.memory_space<vmem>>, vector<1x8x8xf32>
    %351 = vector.shape_cast %350 : vector<1x8x8xf32> to vector<8x8xf32>
    %352 = vector.shape_cast %349 : vector<8x8xf32> to vector<1x8x8xf32>
    tpu.vector_store %arg4[%c1_186, %c0_187, %c0_188], %352 {strides = array<i32>} : memref<16x8x8xf32, #tpu.memory_space<vmem>>, vector<1x8x8xf32>,
    %353 = vector.extract_strided_slice %344 {offsets = [0, 16], sizes = [8, 8], strides = [1, 1]} : vector<8x128xf32> to vector<8x8xf32>
    %c2_189 = arith.constant 2 : index
    %c0_190 = arith.constant 0 : index
    %c0_191 = arith.constant 0 : index
    %354 = vector.load %arg4[%c2_189, %c0_190, %c0_191] : memref<16x8x8xf32, #tpu.memory_space<vmem>>, vector<1x8x8xf32>
    %355 = vector.shape_cast %354 : vector<1x8x8xf32> to vector<8x8xf32>
    %356 = vector.shape_cast %353 : vector<8x8xf32> to vector<1x8x8xf32>
    tpu.vector_store %arg4[%c2_189, %c0_190, %c0_191], %356 {strides = array<i32>} : memref<16x8x8xf32, #tpu.memory_space<vmem>>, vector<1x8x8xf32>,
    %357 = vector.extract_strided_slice %344 {offsets = [0, 24], sizes = [8, 8], strides = [1, 1]} : vector<8x128xf32> to vector<8x8xf32>
    %c3_192 = arith.constant 3 : index
    %c0_193 = arith.constant 0 : index
    %c0_194 = arith.constant 0 : index
    %358 = vector.load %arg4[%c3_192, %c0_193, %c0_194] : memref<16x8x8xf32, #tpu.memory_space<vmem>>, vector<1x8x8xf32>
    %359 = vector.shape_cast %358 : vector<1x8x8xf32> to vector<8x8xf32>
    %360 = vector.shape_cast %357 : vector<8x8xf32> to vector<1x8x8xf32>
    tpu.vector_store %arg4[%c3_192, %c0_193, %c0_194], %360 {strides = array<i32>} : memref<16x8x8xf32, #tpu.memory_space<vmem>>, vector<1x8x8xf32>,
    %361 = vector.extract_strided_slice %344 {offsets = [0, 32], sizes = [8, 8], strides = [1, 1]} : vector<8x128xf32> to vector<8x8xf32>
    %c4_195 = arith.constant 4 : index
    %c0_196 = arith.constant 0 : index
    %c0_197 = arith.constant 0 : index
    %362 = vector.load %arg4[%c4_195, %c0_196, %c0_197] : memref<16x8x8xf32, #tpu.memory_space<vmem>>, vector<1x8x8xf32>
    %363 = vector.shape_cast %362 : vector<1x8x8xf32> to vector<8x8xf32>
    %364 = vector.shape_cast %361 : vector<8x8xf32> to vector<1x8x8xf32>
    tpu.vector_store %arg4[%c4_195, %c0_196, %c0_197], %364 {strides = array<i32>} : memref<16x8x8xf32, #tpu.memory_space<vmem>>, vector<1x8x8xf32>,
    %365 = vector.extract_strided_slice %344 {offsets = [0, 40], sizes = [8, 8], strides = [1, 1]} : vector<8x128xf32> to vector<8x8xf32>
    %c5_198 = arith.constant 5 : index
    %c0_199 = arith.constant 0 : index
    %c0_200 = arith.constant 0 : index
    %366 = vector.load %arg4[%c5_198, %c0_199, %c0_200] : memref<16x8x8xf32, #tpu.memory_space<vmem>>, vector<1x8x8xf32>
    %367 = vector.shape_cast %366 : vector<1x8x8xf32> to vector<8x8xf32>
    %368 = vector.shape_cast %365 : vector<8x8xf32> to vector<1x8x8xf32>
    tpu.vector_store %arg4[%c5_198, %c0_199, %c0_200], %368 {strides = array<i32>} : memref<16x8x8xf32, #tpu.memory_space<vmem>>, vector<1x8x8xf32>,
    %369 = vector.extract_strided_slice %344 {offsets = [0, 48], sizes = [8, 8], strides = [1, 1]} : vector<8x128xf32> to vector<8x8xf32>
    %c6_201 = arith.constant 6 : index
    %c0_202 = arith.constant 0 : index
    %c0_203 = arith.constant 0 : index
    %370 = vector.load %arg4[%c6_201, %c0_202, %c0_203] : memref<16x8x8xf32, #tpu.memory_space<vmem>>, vector<1x8x8xf32>
    %371 = vector.shape_cast %370 : vector<1x8x8xf32> to vector<8x8xf32>
    %372 = vector.shape_cast %369 : vector<8x8xf32> to vector<1x8x8xf32>
    tpu.vector_store %arg4[%c6_201, %c0_202, %c0_203], %372 {strides = array<i32>} : memref<16x8x8xf32, #tpu.memory_space<vmem>>, vector<1x8x8xf32>,
    %373 = vector.extract_strided_slice %344 {offsets = [0, 56], sizes = [8, 8], strides = [1, 1]} : vector<8x128xf32> to vector<8x8xf32>
    %c7_204 = arith.constant 7 : index
    %c0_205 = arith.constant 0 : index
    %c0_206 = arith.constant 0 : index
    %374 = vector.load %arg4[%c7_204, %c0_205, %c0_206] : memref<16x8x8xf32, #tpu.memory_space<vmem>>, vector<1x8x8xf32>
    %375 = vector.shape_cast %374 : vector<1x8x8xf32> to vector<8x8xf32>
    %376 = vector.shape_cast %373 : vector<8x8xf32> to vector<1x8x8xf32>
    tpu.vector_store %arg4[%c7_204, %c0_205, %c0_206], %376 {strides = array<i32>} : memref<16x8x8xf32, #tpu.memory_space<vmem>>, vector<1x8x8xf32>,
    %377 = vector.extract_strided_slice %344 {offsets = [0, 64], sizes = [8, 8], strides = [1, 1]} : vector<8x128xf32> to vector<8x8xf32>
    %c8_207 = arith.constant 8 : index
    %c0_208 = arith.constant 0 : index
    %c0_209 = arith.constant 0 : index
    %378 = vector.load %arg4[%c8_207, %c0_208, %c0_209] : memref<16x8x8xf32, #tpu.memory_space<vmem>>, vector<1x8x8xf32>
    %379 = vector.shape_cast %378 : vector<1x8x8xf32> to vector<8x8xf32>
    %380 = vector.shape_cast %377 : vector<8x8xf32> to vector<1x8x8xf32>
    tpu.vector_store %arg4[%c8_207, %c0_208, %c0_209], %380 {strides = array<i32>} : memref<16x8x8xf32, #tpu.memory_space<vmem>>, vector<1x8x8xf32>,
    %381 = vector.extract_strided_slice %344 {offsets = [0, 72], sizes = [8, 8], strides = [1, 1]} : vector<8x128xf32> to vector<8x8xf32>
    %c9_210 = arith.constant 9 : index
    %c0_211 = arith.constant 0 : index
    %c0_212 = arith.constant 0 : index
    %382 = vector.load %arg4[%c9_210, %c0_211, %c0_212] : memref<16x8x8xf32, #tpu.memory_space<vmem>>, vector<1x8x8xf32>
    %383 = vector.shape_cast %382 : vector<1x8x8xf32> to vector<8x8xf32>
    %384 = vector.shape_cast %381 : vector<8x8xf32> to vector<1x8x8xf32>
    tpu.vector_store %arg4[%c9_210, %c0_211, %c0_212], %384 {strides = array<i32>} : memref<16x8x8xf32, #tpu.memory_space<vmem>>, vector<1x8x8xf32>,
    %385 = vector.extract_strided_slice %344 {offsets = [0, 80], sizes = [8, 8], strides = [1, 1]} : vector<8x128xf32> to vector<8x8xf32>
    %c10_213 = arith.constant 10 : index
    %c0_214 = arith.constant 0 : index
    %c0_215 = arith.constant 0 : index
    %386 = vector.load %arg4[%c10_213, %c0_214, %c0_215] : memref<16x8x8xf32, #tpu.memory_space<vmem>>, vector<1x8x8xf32>
    %387 = vector.shape_cast %386 : vector<1x8x8xf32> to vector<8x8xf32>
    %388 = vector.shape_cast %385 : vector<8x8xf32> to vector<1x8x8xf32>
    tpu.vector_store %arg4[%c10_213, %c0_214, %c0_215], %388 {strides = array<i32>} : memref<16x8x8xf32, #tpu.memory_space<vmem>>, vector<1x8x8xf32>,
    %389 = vector.extract_strided_slice %344 {offsets = [0, 88], sizes = [8, 8], strides = [1, 1]} : vector<8x128xf32> to vector<8x8xf32>
    %c11_216 = arith.constant 11 : index
    %c0_217 = arith.constant 0 : index
    %c0_218 = arith.constant 0 : index
    %390 = vector.load %arg4[%c11_216, %c0_217, %c0_218] : memref<16x8x8xf32, #tpu.memory_space<vmem>>, vector<1x8x8xf32>
    %391 = vector.shape_cast %390 : vector<1x8x8xf32> to vector<8x8xf32>
    %392 = vector.shape_cast %389 : vector<8x8xf32> to vector<1x8x8xf32>
    tpu.vector_store %arg4[%c11_216, %c0_217, %c0_218], %392 {strides = array<i32>} : memref<16x8x8xf32, #tpu.memory_space<vmem>>, vector<1x8x8xf32>,
    %393 = vector.extract_strided_slice %344 {offsets = [0, 96], sizes = [8, 8], strides = [1, 1]} : vector<8x128xf32> to vector<8x8xf32>
    %c12_219 = arith.constant 12 : index
    %c0_220 = arith.constant 0 : index
    %c0_221 = arith.constant 0 : index
    %394 = vector.load %arg4[%c12_219, %c0_220, %c0_221] : memref<16x8x8xf32, #tpu.memory_space<vmem>>, vector<1x8x8xf32>
    %395 = vector.shape_cast %394 : vector<1x8x8xf32> to vector<8x8xf32>
    %396 = vector.shape_cast %393 : vector<8x8xf32> to vector<1x8x8xf32>
    tpu.vector_store %arg4[%c12_219, %c0_220, %c0_221], %396 {strides = array<i32>} : memref<16x8x8xf32, #tpu.memory_space<vmem>>, vector<1x8x8xf32>,
    %397 = vector.extract_strided_slice %344 {offsets = [0, 104], sizes = [8, 8], strides = [1, 1]} : vector<8x128xf32> to vector<8x8xf32>
    %c13_222 = arith.constant 13 : index
    %c0_223 = arith.constant 0 : index
    %c0_224 = arith.constant 0 : index
    %398 = vector.load %arg4[%c13_222, %c0_223, %c0_224] : memref<16x8x8xf32, #tpu.memory_space<vmem>>, vector<1x8x8xf32>
    %399 = vector.shape_cast %398 : vector<1x8x8xf32> to vector<8x8xf32>
    %400 = vector.shape_cast %397 : vector<8x8xf32> to vector<1x8x8xf32>
    tpu.vector_store %arg4[%c13_222, %c0_223, %c0_224], %400 {strides = array<i32>} : memref<16x8x8xf32, #tpu.memory_space<vmem>>, vector<1x8x8xf32>,
    %401 = vector.extract_strided_slice %344 {offsets = [0, 112], sizes = [8, 8], strides = [1, 1]} : vector<8x128xf32> to vector<8x8xf32>
    %c14_225 = arith.constant 14 : index
    %c0_226 = arith.constant 0 : index
    %c0_227 = arith.constant 0 : index
    %402 = vector.load %arg4[%c14_225, %c0_226, %c0_227] : memref<16x8x8xf32, #tpu.memory_space<vmem>>, vector<1x8x8xf32>
    %403 = vector.shape_cast %402 : vector<1x8x8xf32> to vector<8x8xf32>
    %404 = vector.shape_cast %401 : vector<8x8xf32> to vector<1x8x8xf32>
    tpu.vector_store %arg4[%c14_225, %c0_226, %c0_227], %404 {strides = array<i32>} : memref<16x8x8xf32, #tpu.memory_space<vmem>>, vector<1x8x8xf32>,
    %405 = vector.extract_strided_slice %344 {offsets = [0, 120], sizes = [8, 8], strides = [1, 1]} : vector<8x128xf32> to vector<8x8xf32>
    %c15_228 = arith.constant 15 : index
    %c0_229 = arith.constant 0 : index
    %c0_230 = arith.constant 0 : index
    %406 = vector.load %arg4[%c15_228, %c0_229, %c0_230] : memref<16x8x8xf32, #tpu.memory_space<vmem>>, vector<1x8x8xf32>
    %407 = vector.shape_cast %406 : vector<1x8x8xf32> to vector<8x8xf32>
    %408 = vector.shape_cast %405 : vector<8x8xf32> to vector<1x8x8xf32>
    tpu.vector_store %arg4[%c15_228, %c0_229, %c0_230], %408 {strides = array<i32>} : memref<16x8x8xf32, #tpu.memory_space<vmem>>, vector<1x8x8xf32>,
    return
  }
}

</mosaic_0001>

<bundles_post_ra>
// kernel: tsmixer_forward.1
= control target key start
LH: loop header
LB: loop body
LE: loop exit
PB: predicated region body
PF: predicated region fallthrough
CT: control target
= control target key end

     0   :  { %9 = vsyncpa [#allocation4], 0  ;;  %s1844_s15 = smov [#allocation3]   ;;  %s2248_s0 = inlined_call_operand.vmem [shape: f32[16,16,8], index: 0, kind: input, shape index: {}]   ;;  %s2249_s1 = inlined_call_operand.vmem [shape: f32[40,16], index: 1, kind: input, shape index: {}]   ;;  %s2250_s2 = inlined_call_operand.hbm [shape: f32[2,2,128,128], index: 2, kind: input, shape index: {}]   ;;  %s2251_s3 = inlined_call_operand.vmem [shape: f32[168,128], index: 3, kind: input, shape index: {}]   ;;  %s2252_s4 = inlined_call_operand.vmem [shape: f32[16,8,8], index: 4, kind: output, shape index: {}]  }
   0x1   :  { %s19_s16 = sshll.u32 %s1844_s15, 4  ;;  %s1820_s19 = scalar_lea.hbm %s2250_s2, 8192  ;;  %s20_s16 = int_to_ptr.vmem [resolvable:$true] %s19_s16 }
   0x2   :  { %p1821_p0 = scmp.ne.s32.totalorder %s2250_s2, %s1820_s19  ;;  %p1824_p1 = scmp.lt.u32.totalorder %s1820_s19, %s2250_s2 }
   0x4   :  { %p1826_p2 = pnand %p1824_p1, %p1821_p0 }
   0x6   :  { %1829 = shalt.err (!%p1826_p2)
}
   0x7   :  { %s1830_s24 = scalar_lea.vmem %s20_s16, 8192  ;;  %p1835_p4 = scmp.lt.s32.totalorder %s20_s16, %s20_s16 }
   0x8   :  { %p1831_p3 = scmp.ne.s32.totalorder %s20_s16, %s1830_s24  ;;  %p1836_p5 = scmp.lt.s32.totalorder %s1830_s24, %s1830_s24 }
   0xa   :  { %p1837_p6 = por %p1836_p5, %p1835_p4 }
   0xc   :  { %p1838_p7 = pnand %p1837_p6, %p1831_p3 }
   0xe   :  { %1841 = shalt.err (!%p1838_p7)
}
   0xf   :  { %s1845_s25 = smov 128   ;;  %s1846_s26 = smov 8  }
  0x10   :  { %25 = dma.hbm_to_vmem [thread:$0]  %s2250_s2, 8192, %s20_s16, [#allocation4], %s1845_s25, %s1845_s25, %s1846_s26  }
  0x11   :  { %1842 = dma.done.wait [#allocation4], 8192  }
  0x12   :  { %1843 = vsyncadd [#allocation4], 4294959104  ;;  %v1321_v0 = vld [vmem:[%s2248_s0 + $0x20] sm:$0xff]  ;;  %v1319_v1 = vld [vmem:[%s2248_s0 + $0x10] sm:$0xff]  ;;  %s1847_s7 = smov 16   ;;  %s1848_s15 = smov 24  }
  0x13   :  { %55 = vrot.lane.b32.xlu1 %v1321_v0, %s1847_s7  ;;  %41 = vrot.lane.b32.xlu0 %v1319_v1, %s1846_s26  ;;  %v1322_v2 = vld [vmem:[%s2248_s0 + $0x28] sm:$0xff]  ;;  %v1320_v3 = vld [vmem:[%s2248_s0 + $0x18] sm:$0xff]  ;;  %vm33_vm0 = vcmask 64512   ;;  %s1849_s24 = smov 32   ;;  %s1850_s30 = smov 40   ;;  %vm47_vm1 = vcmask 130112  }
  0x14   :  { %v1324_v4 = vld [vmem:[%s2248_s0 + $0x38] sm:$0xff]  ;;  %v1323_v5 = vld [vmem:[%s2248_s0 + $0x30] sm:$0xff]  ;;  %v1326_v6 = vld [vmem:[%s2248_s0 + $0x48] sm:$0xff]  ;;  %s1851_s2 = smov 48   ;;  %s1852_s14 = smov 56   ;;  %vm61_vm2 = vcmask 195712  }
  0x15   :  { %v1325_v7 = vld [vmem:[%s2248_s0 + $0x40] sm:$0xff]  ;;  %v32_v9 = vld [vmem:[%s2248_s0 + $0x8] sm:$0xff]  ;;  %v1328_v10 = vld [vmem:[%s2248_s0 + $0x58] sm:$0xff]  ;;  %s1853_s20 = smov 64   ;;  %s1854_s27 = smov 72   ;;  %vm75_vm3 = vcmask 261312  }
  0x16   :  { %v31_v8 = vld [vmem:[%s2248_s0] sm:$0xff]  ;;  %35 = vst.msk [vmem:[#allocation2 + $0x8] sm:$0xff] %vm33_vm0, %v32_v9  ;;  %v1327_v11 = vld [vmem:[%s2248_s0 + $0x50] sm:$0xff]  ;;  %v1330_v12 = vld [vmem:[%s2248_s0 + $0x68] sm:$0xff]  ;;  %s1855_s8 = smov 80   ;;  %s1856_s13 = smov 88  }
  0x17   :  { %57 = vrot.lane.b32.xlu1 %v1322_v2, %s1847_s7  ;;  %43 = vrot.lane.b32.xlu0 %v1320_v3, %s1846_s26  ;;  %34 = vst.msk [vmem:[#allocation2] sm:$0xff] %vm33_vm0, %v31_v8  ;;  %v1329_v13 = vld [vmem:[%s2248_s0 + $0x60] sm:$0xff]  ;;  %v1332_v14 = vld [vmem:[%s2248_s0 + $0x78] sm:$0xff]  ;;  %s1857_s21 = smov 96   ;;  %s1858_s29 = smov 104   ;;  %vm89_vm4 = vcmask 326912  }
  0x18   :  { %v1331_v15 = vld [vmem:[%s2248_s0 + $0x70] sm:$0xff]  ;;  %v1334_v16 = vld [vmem:[%s2248_s0 + $0x88] sm:$0xff]  ;;  %v1333_v17 = vld [vmem:[%s2248_s0 + $0x80] sm:$0xff]  ;;  %s1859_s11 = smov 112   ;;  %s1860_s19 = smov 120   ;;  %vm103_vm5 = vcmask 392512  }
  0x19   :  { %v1336_v18 = vld [vmem:[%s2248_s0 + $0x98] sm:$0xff]  ;;  %v1335_v19 = vld [vmem:[%s2248_s0 + $0x90] sm:$0xff]  ;;  %v1338_v20 = vld [vmem:[%s2248_s0 + $0xa8] sm:$0xff]  ;;  %vm117_vm6 = vcmask 458112   ;;  %vm131_vm7 = vcmask 523712   ;;  %vm145_vm8 = vcmask 589312  }
  0x1a   :  { %v1337_v21 = vld [vmem:[%s2248_s0 + $0xa0] sm:$0xff]  ;;  %v1340_v22 = vld [vmem:[%s2248_s0 + $0xb8] sm:$0xff]  ;;  %v1339_v23 = vld [vmem:[%s2248_s0 + $0xb0] sm:$0xff]  ;;  %vm159_vm9 = vcmask 654912   ;;  %vm173_vm10 = vcmask 720512   ;;  %vm187_vm11 = vcmask 786112  }
  0x1b   :  { %71 = vrot.lane.b32.xlu1 %v1324_v4, %s1848_s15  ;;  %69 = vrot.lane.b32.xlu0 %v1323_v5, %s1848_s15  ;;  %v1342_v24 = vld [vmem:[%s2248_s0 + $0xc8] sm:$0xff]  ;;  %v1341_v25 = vld [vmem:[%s2248_s0 + $0xc0] sm:$0xff]  ;;  %vm201_vm12 = vcmask 851712   ;;  %vm215_vm13 = vcmask 917312   ;;  %vm229_vm14 = vcmask 982912   ;;  %vm243_vm15 = vcmask 1048512  }
  0x1c   :  { %v1344_v26 = vld [vmem:[%s2248_s0 + $0xd8] sm:$0xff]  ;;  %v1343_v27 = vld [vmem:[%s2248_s0 + $0xd0] sm:$0xff]  ;;  %v1346_v28 = vld [vmem:[%s2248_s0 + $0xe8] sm:$0xff] }
  0x1d   :  { %v1345_v29 = vld [vmem:[%s2248_s0 + $0xe0] sm:$0xff]  ;;  %v1348_v30 = vld [vmem:[%s2248_s0 + $0xf8] sm:$0xff]  ;;  %v1347_v31 = vld [vmem:[%s2248_s0 + $0xf0] sm:$0xff] }
  0x1e   :  { %v248_v2 = vld [vmem:[%s2249_s1] sm:$0xff] }
  0x1f   :  { %85 = vrot.lane.b32.xlu1 %v1326_v6, %s1849_s24  ;;  %83 = vrot.lane.b32.xlu0 %v1325_v7, %s1849_s24 }
  0x23   :  { %99 = vrot.lane.b32.xlu1 %v1328_v10, %s1850_s30  ;;  %97 = vrot.lane.b32.xlu0 %v1327_v11, %s1850_s30 }
  0x27   :  { %113 = vrot.lane.b32.xlu1 %v1330_v12, %s1851_s2  ;;  %111 = vrot.lane.b32.xlu0 %v1329_v13, %s1851_s2 }
  0x2b   :  { %127 = vrot.lane.b32.xlu1 %v1332_v14, %s1852_s14  ;;  %125 = vrot.lane.b32.xlu0 %v1331_v15, %s1852_s14 }
  0x2f   :  { %141 = vrot.lane.b32.xlu1 %v1334_v16, %s1853_s20  ;;  %139 = vrot.lane.b32.xlu0 %v1333_v17, %s1853_s20 }
  0x33   :  { %155 = vrot.lane.b32.xlu1 %v1336_v18, %s1854_s27  ;;  %153 = vrot.lane.b32.xlu0 %v1335_v19, %s1854_s27 }
  0x37   :  { %169 = vrot.lane.b32.xlu1 %v1338_v20, %s1855_s8  ;;  %167 = vrot.lane.b32.xlu0 %v1337_v21, %s1855_s8 }
  0x3b   :  { %183 = vrot.lane.b32.xlu1 %v1340_v22, %s1856_s13  ;;  %181 = vrot.lane.b32.xlu0 %v1339_v23, %s1856_s13 }
  0x3f   :  { %197 = vrot.lane.b32.xlu1 %v1342_v24, %s1857_s21  ;;  %195 = vrot.lane.b32.xlu0 %v1341_v25, %s1857_s21 }
  0x43   :  { %211 = vrot.lane.b32.xlu1 %v1344_v26, %s1858_s29  ;;  %209 = vrot.lane.b32.xlu0 %v1343_v27, %s1858_s29  ;;  %v249_v26 = vld [vmem:[%s2249_s1 + $0x8] sm:$0xff]  ;;  %v430_v27 = vld [vmem:[#allocation3] sm:$0xff] }
  0x47   :  { %225 = vrot.lane.b32.xlu1 %v1346_v28, %s1859_s11  ;;  %223 = vrot.lane.b32.xlu0 %v1345_v29, %s1859_s11  ;;  %v431_v28 = vld [vmem:[#allocation3 + $0x8] sm:$0xff] }
  0x48   :  { %v1617_v29 = vpack.c.bf16 %v431_v28, %v430_v27 }
  0x4a   :  { %1618 = vmatprep.subr.bf16.mxu1 %v1617_v29 }
  0x4b   :  { %239 = vrot.lane.b32.xlu1 %v1348_v30, %s1860_s19  ;;  %237 = vrot.lane.b32.xlu0 %v1347_v31, %s1860_s19  ;;  %v251_v30 = vld [vmem:[%s2251_s3 + $0x8] sm:$0xff]  ;;  %v250_v31 = vld [vmem:[%s2251_s3] sm:$0xff] }
  0x4c   :  { %1620 = vmatpush3.bf16.msra.mxu1 %v1617_v29 }
  0x85   :  { %v56_v32 = vpop.permute.xlu1 %55  ;;  %v42_v33 = vpop.permute.xlu0 %41 }
  0x86   :  { %48 = vst.msk [vmem:[#allocation2] sm:$0xff] %vm47_vm1, %v42_v33 }
  0x87   :  { %62 = vst.msk [vmem:[#allocation2] sm:$0xff] %vm61_vm2, %v56_v32 }
  0x89   :  { %v58_v34 = vpop.permute.xlu1 %57  ;;  %v44_v35 = vpop.permute.xlu0 %43 }
  0x8a   :  { %49 = vst.msk [vmem:[#allocation2 + $0x8] sm:$0xff] %vm47_vm1, %v44_v35  ;;  %vm288_vm1 = vcmask 130048  }
  0x8b   :  { %63 = vst.msk [vmem:[#allocation2 + $0x8] sm:$0xff] %vm61_vm2, %v58_v34  ;;  %1456 = vmatprep.mubr.msk.f32.mxu0 %vm288_vm1, %v248_v2 }
  0x8d   :  { %v72_v36 = vpop.permute.xlu1 %71  ;;  %v70_v37 = vpop.permute.xlu0 %69 }
  0x8e   :  { %77 = vst.msk [vmem:[#allocation2 + $0x8] sm:$0xff] %vm75_vm3, %v72_v36  ;;  %76 = vst.msk [vmem:[#allocation2] sm:$0xff] %vm75_vm3, %v70_v37 }
  0x91   :  { %v86_v38 = vpop.permute.xlu1 %85  ;;  %v84_v39 = vpop.permute.xlu0 %83 }
  0x92   :  { %91 = vst.msk [vmem:[#allocation2 + $0x8] sm:$0xff] %vm89_vm4, %v86_v38  ;;  %90 = vst.msk [vmem:[#allocation2] sm:$0xff] %vm89_vm4, %v84_v39 }
  0x95   :  { %v100_v40 = vpop.permute.xlu1 %99  ;;  %v98_v41 = vpop.permute.xlu0 %97 }
  0x96   :  { %105 = vst.msk [vmem:[#allocation2 + $0x8] sm:$0xff] %vm103_vm5, %v100_v40  ;;  %104 = vst.msk [vmem:[#allocation2] sm:$0xff] %vm103_vm5, %v98_v41 }
  0x99   :  { %v114_v42 = vpop.permute.xlu1 %113  ;;  %v112_v43 = vpop.permute.xlu0 %111 }
  0x9a   :  { %119 = vst.msk [vmem:[#allocation2 + $0x8] sm:$0xff] %vm117_vm6, %v114_v42  ;;  %118 = vst.msk [vmem:[#allocation2] sm:$0xff] %vm117_vm6, %v112_v43 }
  0x9d   :  { %v128_v44 = vpop.permute.xlu1 %127  ;;  %v126_v45 = vpop.permute.xlu0 %125 }
  0x9e   :  { %133 = vst.msk [vmem:[#allocation2 + $0x8] sm:$0xff] %vm131_vm7, %v128_v44  ;;  %132 = vst.msk [vmem:[#allocation2] sm:$0xff] %vm131_vm7, %v126_v45 }
  0xa1   :  { %v142_v46 = vpop.permute.xlu1 %141  ;;  %v140_v47 = vpop.permute.xlu0 %139 }
  0xa2   :  { %147 = vst.msk [vmem:[#allocation2 + $0x8] sm:$0xff] %vm145_vm8, %v142_v46  ;;  %146 = vst.msk [vmem:[#allocation2] sm:$0xff] %vm145_vm8, %v140_v47 }
  0xa5   :  { %v156_v48 = vpop.permute.xlu1 %155  ;;  %v154_v49 = vpop.permute.xlu0 %153 }
  0xa6   :  { %161 = vst.msk [vmem:[#allocation2 + $0x8] sm:$0xff] %vm159_vm9, %v156_v48  ;;  %160 = vst.msk [vmem:[#allocation2] sm:$0xff] %vm159_vm9, %v154_v49 }
  0xa9   :  { %v170_v50 = vpop.permute.xlu1 %169  ;;  %v168_v51 = vpop.permute.xlu0 %167 }
  0xaa   :  { %175 = vst.msk [vmem:[#allocation2 + $0x8] sm:$0xff] %vm173_vm10, %v170_v50  ;;  %174 = vst.msk [vmem:[#allocation2] sm:$0xff] %vm173_vm10, %v168_v51  ;;  %vm1862_vm10 = vmmov 0  }
  0xad   :  { %v184_v52 = vpop.permute.xlu1 %183  ;;  %v182_v53 = vpop.permute.xlu0 %181 }
  0xae   :  { %189 = vst.msk [vmem:[#allocation2 + $0x8] sm:$0xff] %vm187_vm11, %v184_v52  ;;  %188 = vst.msk [vmem:[#allocation2] sm:$0xff] %vm187_vm11, %v182_v53 }
  0xb1   :  { %v198_v54 = vpop.permute.xlu1 %197  ;;  %v196_v55 = vpop.permute.xlu0 %195 }
  0xb2   :  { %203 = vst.msk [vmem:[#allocation2 + $0x8] sm:$0xff] %vm201_vm12, %v198_v54  ;;  %202 = vst.msk [vmem:[#allocation2] sm:$0xff] %vm201_vm12, %v196_v55 }
  0xb5   :  { %v212_v56 = vpop.permute.xlu1 %211  ;;  %v210_v57 = vpop.permute.xlu0 %209 }
  0xb6   :  { %217 = vst.msk [vmem:[#allocation2 + $0x8] sm:$0xff] %vm215_vm13, %v212_v56  ;;  %216 = vst.msk [vmem:[#allocation2] sm:$0xff] %vm215_vm13, %v210_v57 }
  0xb9   :  { %v226_v58 = vpop.permute.xlu1 %225  ;;  %v224_v59 = vpop.permute.xlu0 %223 }
  0xba   :  { %231 = vst.msk [vmem:[#allocation2 + $0x8] sm:$0xff] %vm229_vm14, %v226_v58  ;;  %230 = vst.msk [vmem:[#allocation2] sm:$0xff] %vm229_vm14, %v224_v59 }
  0xbd   :  { %v240_v60 = vpop.permute.xlu1 %239  ;;  %v238_v61 = vpop.permute.xlu0 %237 }
  0xbe   :  { %245 = vst.msk [vmem:[#allocation2 + $0x8] sm:$0xff] %vm243_vm15, %v240_v60  ;;  %244 = vst.msk [vmem:[#allocation2] sm:$0xff] %vm243_vm15, %v238_v61 }
  0xc5   :  { %v2030_v62 = vld [vmem:[#allocation2 + $0x8] sm:$0xff]  ;;  %v2032_v63 = vld [vmem:[#allocation2] sm:$0xff] }
  0xc6   :  { %262 = vadd.xlane.f32.xlu1 %v2030_v62  ;;  %260 = vadd.xlane.f32.xlu0 %v2032_v63  ;;  %v264_v0 = vmul.f32 %v2032_v63, %v2032_v63  ;;  %v265_v1 = vmul.f32 %v2030_v62, %v2030_v62 }
  0xca   :  { %266 = vadd.xlane.f32.xlu0 %v264_v0 }
  0xce   :  { %268 = vadd.xlane.f32.xlu0 %v265_v1 }
 0x153   :  { %v261_v3 = vpop.xlane.xlu0 %260  ;;  %v263_v5 = vpop.xlane.xlu1 %262 }
 0x154   :  { %v270_v4 = vmul.f32 0.0078125, %v261_v3  ;;  %v271_v7 = vmul.f32 0.0078125, %v263_v5 }
 0x156   :  { %v274_v8 = vmul.f32 %v270_v4, %v270_v4  ;;  %v275_v10 = vmul.f32 %v271_v7, %v271_v7  ;;  %v285_v20 = vsub.f32 %v2030_v62, %v271_v7  ;;  %v284_v21 = vsub.f32 %v2032_v63, %v270_v4 }
 0x157   :  { %v267_v6 = vpop.xlane.xlu0 %266 }
 0x158   :  { %v272_v9 = vmul.f32 0.0078125, %v267_v6 }
 0x15a   :  { %v276_v11 = vsub.f32 %v272_v9, %v274_v8 }
 0x15b   :  { %v269_v12 = vpop.xlane.xlu0 %268 }
 0x15c   :  { %v278_v13 = vmax.f32 %v276_v11, 0.0  ;;  %v273_v14 = vmul.f32 0.0078125, %v269_v12 }
 0x15e   :  { %v280_v15 = vadd.f32 1e-05, %v278_v13  ;;  %v277_v16 = vsub.f32 %v273_v14, %v275_v10 }
 0x160   :  { %v279_v17 = vmax.f32 %v277_v16, 0.0  ;;  %1772 = vrsqrt.f32 %v280_v15 }
 0x162   :  { %v281_v18 = vadd.f32 1e-05, %v279_v17 }
 0x164   :  { %1774 = vrsqrt.f32 %v281_v18 }
 0x16a   :  { %v1773_v19 = vpop.eup %1772 }
 0x16b   :  { %v286_v23 = vmul.f32 %v1773_v19, %v284_v21 }
 0x16e   :  { %v1775_v22 = vpop.eup %1774 }
 0x16f   :  { %v287_v24 = vmul.f32 %v1775_v22, %v285_v20 }
 0x171   :  { %v1613_v25 = vpack.c.bf16 %v287_v24, %v286_v23 }
 0x173   :  { %1614 = vmatprep.subr.bf16.mxu0 %v1613_v25 }
 0x174   :  { %1616 = vmatpush3.bf16.msra.mxu0 %v1613_v25 }
 0x177   :  { %1457 = vmatmul.mubr.msk.f32.vlgmr.msra.gmra.mrb[0].mxu0 %vm288_vm1, %v249_v26 }
 0x24a   :  { %v1458_v32 = vpop.f32.mrb[0].mxu0 }
 0x24b   :  { %v367_v33 = vadd.f32 %v1458_v32, %v251_v30  ;;  %v361_v34 = vpop.f32.mrb[1].mxu0 }
 0x24c   :  { %v362_v35 = vadd.f32 %v361_v34, %v250_v31  ;;  %v432_v34 = vld [vmem:[#allocation3 + $0x10] sm:$0xff] }
 0x24d   :  { %v373_v36 = vmul.f32 0.70710677, %v367_v33  ;;  %v371_v23 = vmul.f32 0.5, %v367_v33 }
 0x24e   :  { %v372_v37 = vmul.f32 0.70710677, %v362_v35  ;;  %v370_v26 = vmul.f32 0.5, %v362_v35  ;;  %v433_v35 = vld [vmem:[#allocation3 + $0x18] sm:$0xff] }
 0x24f   :  { %v375_v38 = vand.u32 2147483647, %v373_v36  ;;  %vm419_vm2 = vcmp.lt.f32.partialorder %v373_v36, 0.0  ;;  %v1621_v36 = vpack.c.bf16 %v433_v35, %v432_v34  ;;  %v455_v35 = vld [vmem:[#allocation3 + $0xc0] sm:$0xff] }
 0x250   :  { %v374_v39 = vand.u32 2147483647, %v372_v37  ;;  %vm418_vm3 = vcmp.lt.f32.partialorder %v372_v37, 0.0 }
 0x251   :  { %v377_v40 = vmul.f32 0.3275911, %v375_v38  ;;  %v407_v47 = vsub.f32 0.0, %v375_v38  ;;  %1622 = vmatprep.subr.bf16.mxu1 %v1621_v36 }
 0x252   :  { %v376_v41 = vmul.f32 0.3275911, %v374_v39  ;;  %v406_v50 = vsub.f32 0.0, %v374_v39  ;;  %1624 = vmatpush3.bf16.msra.mxu1 %v1621_v36  ;;  %v456_v36 = vld [vmem:[#allocation3 + $0xc8] sm:$0xff] }
 0x253   :  { %v379_v42 = vadd.f32 1.0, %v377_v40  ;;  %v409_v53 = vmul.f32 %v407_v47, %v375_v38  ;;  %v436_v38 = vld [vmem:[#allocation3 + $0x30] sm:$0xff]  ;;  %v442_v47 = vld [vmem:[#allocation3 + $0x60] sm:$0xff] }
 0x254   :  { %v378_v43 = vadd.f32 1.0, %v376_v41  ;;  %v408_v56 = vmul.f32 %v406_v50, %v374_v39  ;;  %v437_v39 = vld [vmem:[#allocation3 + $0x38] sm:$0xff]  ;;  %v438_v41 = vld [vmem:[#allocation3 + $0x40] sm:$0xff]  ;;  %v444_v50 = vld [vmem:[#allocation3 + $0x70] sm:$0xff] }
 0x255   :  { %1776 = vrcp.f32 %v379_v42  ;;  %v412_v59 = vmul.f32 1.442695, %v409_v53  ;;  %v1629_v40 = vpack.c.bf16 %v437_v39, %v436_v38  ;;  %v459_v39 = vld [vmem:[#allocation3 + $0xe0] sm:$0xff] }
 0x256   :  { %1778 = vrcp.f32 %v378_v43  ;;  %v410_v0 = vmul.f32 1.442695, %v408_v56 }
 0x257   :  { %1780 = vpow2.f32 %v412_v59 }
 0x258   :  { %1782 = vpow2.f32 %v410_v0 }
 0x25f   :  { %v1777_v44 = vpop.eup %1776 }
 0x260   :  { %v1779_v45 = vpop.eup %1778  ;;  %v383_v46 = vmul.f32 %v1777_v44, %v379_v42  ;;  %v439_v42 = vld [vmem:[#allocation3 + $0x48] sm:$0xff] }
 0x261   :  { %v382_v48 = vmul.f32 %v1779_v45, %v378_v43  ;;  %v1781_v13 = vpop.eup %1780  ;;  %v1633_v43 = vpack.c.bf16 %v439_v42, %v438_v41  ;;  %v461_v42 = vld [vmem:[#allocation3 + $0xf0] sm:$0xff] }
 0x262   :  { %v385_v49 = vsub.f32 2.0, %v383_v46  ;;  %v1783_v15 = vpop.eup %1782 }
 0x263   :  { %v384_v51 = vsub.f32 2.0, %v382_v48  ;;  %v443_v48 = vld [vmem:[#allocation3 + $0x68] sm:$0xff] }
 0x264   :  { %v387_v52 = vmul.f32 %v1777_v44, %v385_v49  ;;  %v440_v44 = vld [vmem:[#allocation3 + $0x50] sm:$0xff]  ;;  %v1641_v49 = vpack.c.bf16 %v443_v48, %v442_v47 }
 0x265   :  { %v386_v54 = vmul.f32 %v1779_v45, %v384_v51  ;;  %v441_v45 = vld [vmem:[#allocation3 + $0x58] sm:$0xff] }
 0x266   :  { %v389_v55 = vmul.f32 1.0614054, %v387_v52  ;;  %v1637_v46 = vpack.c.bf16 %v441_v45, %v440_v44  ;;  %v445_v51 = vld [vmem:[#allocation3 + $0x78] sm:$0xff]  ;;  %v257_v45 = vld [vmem:[%s2251_s3 + $0x38] sm:$0xff] }
 0x267   :  { %v388_v57 = vmul.f32 1.0614054, %v386_v54 }
 0x268   :  { %v391_v58 = vadd.f32 -1.4531521, %v389_v55 }
 0x269   :  { %v390_v60 = vadd.f32 -1.4531521, %v388_v57 }
 0x26a   :  { %v393_v61 = vmul.f32 %v391_v58, %v387_v52 }
 0x26b   :  { %v392_v1 = vmul.f32 %v390_v60, %v386_v54 }
 0x26c   :  { %v395_v2 = vadd.f32 1.4214138, %v393_v61 }
 0x26d   :  { %v394_v3 = vadd.f32 1.4214138, %v392_v1 }
 0x26e   :  { %v397_v4 = vmul.f32 %v395_v2, %v387_v52 }
 0x26f   :  { %v396_v5 = vmul.f32 %v394_v3, %v386_v54 }
 0x270   :  { %v399_v6 = vadd.f32 -0.28449672, %v397_v4 }
 0x271   :  { %v398_v7 = vadd.f32 -0.28449672, %v396_v5 }
 0x272   :  { %v401_v8 = vmul.f32 %v399_v6, %v387_v52 }
 0x273   :  { %v400_v9 = vmul.f32 %v398_v7, %v386_v54 }
 0x274   :  { %v403_v10 = vadd.f32 0.2548296, %v401_v8 }
 0x275   :  { %v402_v11 = vadd.f32 0.2548296, %v400_v9 }
 0x276   :  { %v405_v12 = vmul.f32 %v403_v10, %v387_v52  ;;  %v1645_v52 = vpack.c.bf16 %v445_v51, %v444_v50  ;;  %v253_v10 = vld [vmem:[%s2251_s3 + $0x18] sm:$0xff] }
 0x277   :  { %v404_v14 = vmul.f32 %v402_v11, %v386_v54 }
 0x278   :  { %v415_v16 = vmul.f32 %v1781_v13, %v405_v12  ;;  %v252_v12 = vld [vmem:[%s2251_s3 + $0x10] sm:$0xff] }
 0x279   :  { %v414_v17 = vmul.f32 %v1783_v15, %v404_v14  ;;  %v254_v15 = vld [vmem:[%s2251_s3 + $0x20] sm:$0xff] }
 0x27a   :  { %v417_v18 = vsub.f32 1.0, %v415_v16 }
 0x27b   :  { %v416_v19 = vsub.f32 1.0, %v414_v17 }
 0x27c   :  { %v421_v20 = vsub.f32 0.0, %v417_v18 }
 0x27d   :  { %v420_v21 = vsub.f32 0.0, %v416_v19 }
 0x27e   :  { %v423_v22 = vsel %vm419_vm2, %v421_v20, %v417_v18  ;;  %v255_v18 = vld [vmem:[%s2251_s3 + $0x28] sm:$0xff] }
 0x27f   :  { %v425_v24 = vadd.f32 1.0, %v423_v22  ;;  %v422_v25 = vsel %vm418_vm3, %v420_v21, %v416_v19  ;;  %v447_v21 = vld [vmem:[#allocation3 + $0x80] sm:$0xff]  ;;  %v448_v22 = vld [vmem:[#allocation3 + $0x88] sm:$0xff] }
 0x280   :  { %v424_v27 = vadd.f32 1.0, %v422_v25  ;;  %v450_v25 = vld [vmem:[#allocation3 + $0x98] sm:$0xff] }
 0x281   :  { %v427_v28 = vmul.f32 %v425_v24, %v371_v23  ;;  %v1649_v23 = vpack.c.bf16 %v448_v22, %v447_v21  ;;  %v449_v24 = vld [vmem:[#allocation3 + $0x90] sm:$0xff] }
 0x282   :  { %v426_v29 = vmul.f32 %v424_v27, %v370_v26  ;;  %v1653_v26 = vpack.c.bf16 %v450_v25, %v449_v24  ;;  %v451_v27 = vld [vmem:[#allocation3 + $0xa0] sm:$0xff] }
 0x283   :  { %v2057_v30 = vadd.f32 %v427_v28, %v2030_v62  ;;  %v434_v62 = vld [vmem:[#allocation3 + $0x20] sm:$0xff]  ;;  %1650 = vmatprep.subr.bf16.mxu0 %v1649_v23  ;;  %v452_v28 = vld [vmem:[#allocation3 + $0xa8] sm:$0xff] }
 0x284   :  { %v2060_v31 = vadd.f32 %v426_v29, %v2032_v63  ;;  %v435_v63 = vld [vmem:[#allocation3 + $0x28] sm:$0xff]  ;;  %1652 = vmatpush3.bf16.msra.mxu0 %v1649_v23  ;;  %v1657_v29 = vpack.c.bf16 %v452_v28, %v451_v27 }
 0x285   :  { %465 = vadd.xlane.f32.xlu0 %v2057_v30  ;;  %v468_v32 = vmul.f32 %v2057_v30, %v2057_v30  ;;  %v1625_v37 = vpack.c.bf16 %v435_v63, %v434_v62  ;;  %1654 = vmatprep.subr.bf16.mxu0 %v1653_v26  ;;  %v1665_v62 = vpack.c.bf16 %v456_v36, %v455_v35  ;;  %v457_v63 = vld [vmem:[#allocation3 + $0xd0] sm:$0xff] }
 0x286   :  { %463 = vadd.xlane.f32.xlu1 %v2060_v31  ;;  %v467_v33 = vmul.f32 %v2060_v31, %v2060_v31 }
 0x287   :  { %1626 = vmatprep.subr.bf16.mxu1 %v1625_v37 }
 0x288   :  { %1628 = vmatpush3.bf16.msra.mxu1 %v1625_v37  ;;  %1656 = vmatpush3.bf16.msra.mxu0 %v1653_v26  ;;  %v458_v37 = vld [vmem:[#allocation3 + $0xd8] sm:$0xff] }
 0x289   :  { %471 = vadd.xlane.f32.xlu0 %v468_v32  ;;  %1630 = vmatprep.subr.bf16.mxu1 %v1629_v40  ;;  %v453_v32 = vld [vmem:[#allocation3 + $0xb0] sm:$0xff]  ;;  %v1669_v38 = vpack.c.bf16 %v458_v37, %v457_v63 }
 0x28a   :  { %469 = vadd.xlane.f32.xlu1 %v467_v33  ;;  %1658 = vmatprep.subr.bf16.mxu0 %v1657_v29  ;;  %v454_v33 = vld [vmem:[#allocation3 + $0xb8] sm:$0xff] }
 0x28b   :  { %v1661_v34 = vpack.c.bf16 %v454_v33, %v453_v32 }
 0x28c   :  { %1632 = vmatpush3.bf16.msra.mxu1 %v1629_v40  ;;  %1660 = vmatpush3.bf16.msra.mxu0 %v1657_v29  ;;  %v460_v40 = vld [vmem:[#allocation3 + $0xe8] sm:$0xff] }
 0x28d   :  { %1634 = vmatprep.subr.bf16.mxu1 %v1633_v43  ;;  %1662 = vmatprep.subr.bf16.mxu0 %v1661_v34  ;;  %v1673_v41 = vpack.c.bf16 %v460_v40, %v459_v39 }
 0x290   :  { %1636 = vmatpush3.bf16.msra.mxu1 %v1633_v43  ;;  %1664 = vmatpush3.bf16.msra.mxu0 %v1661_v34  ;;  %v462_v43 = vld [vmem:[#allocation3 + $0xf8] sm:$0xff] }
 0x291   :  { %1638 = vmatprep.subr.bf16.mxu1 %v1637_v46  ;;  %1666 = vmatprep.subr.bf16.mxu0 %v1665_v62  ;;  %v1677_v44 = vpack.c.bf16 %v462_v43, %v461_v42 }
 0x294   :  { %1640 = vmatpush3.bf16.msra.mxu1 %v1637_v46  ;;  %1668 = vmatpush3.bf16.msra.mxu0 %v1665_v62  ;;  %v256_v46 = vld [vmem:[%s2251_s3 + $0x30] sm:$0xff] }
 0x295   :  { %1642 = vmatprep.subr.bf16.mxu1 %v1641_v49  ;;  %1670 = vmatprep.subr.bf16.mxu0 %v1669_v38 }
 0x298   :  { %1644 = vmatpush3.bf16.msra.mxu1 %v1641_v49  ;;  %1672 = vmatpush3.bf16.msra.mxu0 %v1669_v38 }
 0x299   :  { %1646 = vmatprep.subr.bf16.mxu1 %v1645_v52  ;;  %1674 = vmatprep.subr.bf16.mxu0 %v1673_v41 }
 0x29c   :  { %1648 = vmatpush3.bf16.msra.mxu1 %v1645_v52  ;;  %1676 = vmatpush3.bf16.msra.mxu0 %v1673_v41 }
 0x29d   :  { %1678 = vmatprep.subr.bf16.mxu0 %v1677_v44 }
 0x2a0   :  { %1680 = vmatpush3.bf16.msra.mxu0 %v1677_v44 }
 0x312   :  { %v466_v53 = vpop.xlane.xlu0 %465 }
 0x313   :  { %v474_v54 = vmul.f32 0.0078125, %v466_v53  ;;  %v464_v55 = vpop.xlane.xlu1 %463 }
 0x314   :  { %v473_v56 = vmul.f32 0.0078125, %v464_v55 }
 0x315   :  { %v478_v58 = vmul.f32 %v474_v54, %v474_v54  ;;  %v488_v7 = vsub.f32 %v2057_v30, %v474_v54 }
 0x316   :  { %v472_v57 = vpop.xlane.xlu0 %471  ;;  %v477_v61 = vmul.f32 %v473_v56, %v473_v56  ;;  %v487_v9 = vsub.f32 %v2060_v31, %v473_v56 }
 0x317   :  { %v476_v59 = vmul.f32 0.0078125, %v472_v57  ;;  %v470_v60 = vpop.xlane.xlu1 %469 }
 0x318   :  { %v475_v0 = vmul.f32 0.0078125, %v470_v60 }
 0x319   :  { %v480_v1 = vsub.f32 %v476_v59, %v478_v58 }
 0x31a   :  { %v479_v2 = vsub.f32 %v475_v0, %v477_v61 }
 0x31b   :  { %v482_v3 = vmax.f32 %v480_v1, 0.0 }
 0x31c   :  { %v481_v4 = vmax.f32 %v479_v2, 0.0 }
 0x31d   :  { %v484_v5 = vadd.f32 1e-05, %v482_v3 }
 0x31e   :  { %v483_v6 = vadd.f32 1e-05, %v481_v4 }
 0x31f   :  { %1784 = vrsqrt.f32 %v484_v5 }
 0x320   :  { %1786 = vrsqrt.f32 %v483_v6 }
 0x329   :  { %v1785_v8 = vpop.eup %1784 }
 0x32a   :  { %v1787_v11 = vpop.eup %1786  ;;  %v490_v13 = vmul.f32 %v1785_v8, %v488_v7 }
 0x32b   :  { %v489_v14 = vmul.f32 %v1787_v11, %v487_v9 }
 0x32c   :  { %v492_v16 = vmul.f32 %v490_v13, %v253_v10 }
 0x32d   :  { %v491_v17 = vmul.f32 %v489_v14, %v252_v12 }
 0x32e   :  { %v494_v20 = vadd.f32 %v492_v16, %v255_v18 }
 0x32f   :  { %v493_v19 = vadd.f32 %v491_v17, %v254_v15 }
 0x331   :  { %1491 = vmatprep.mubr.f32.mxu1 %v493_v19 }
 0x332   :  { %1492 = vmatmul.mubr.f32.vlgmr.msra.gmra.mrb[0].mxu1 %v494_v20 }
 0x405   :  { %v1493_v47 = vpop.f32.mrb[0].mxu1 }
 0x406   :  { %v567_v48 = vadd.f32 %v1493_v47, %v257_v45  ;;  %v561_v49 = vpop.f32.mrb[1].mxu1  ;;  %v259_v45 = vld [vmem:[%s2251_s3 + $0x48] sm:$0xff] }
 0x407   :  { %v562_v50 = vadd.f32 %v561_v49, %v256_v46  ;;  %v258_v46 = vld [vmem:[%s2251_s3 + $0x40] sm:$0xff] }
 0x408   :  { %v573_v51 = vmul.f32 0.70710677, %v567_v48  ;;  %v571_v42 = vmul.f32 0.5, %v567_v48 }
 0x409   :  { %v572_v52 = vmul.f32 0.70710677, %v562_v50  ;;  %v570_v40 = vmul.f32 0.5, %v562_v50 }
 0x40a   :  { %v575_v53 = vand.u32 2147483647, %v573_v51  ;;  %vm619_vm4 = vcmp.lt.f32.partialorder %v573_v51, 0.0 }
 0x40b   :  { %v574_v54 = vand.u32 2147483647, %v572_v52  ;;  %vm618_vm5 = vcmp.lt.f32.partialorder %v572_v52, 0.0 }
 0x40c   :  { %v577_v55 = vmul.f32 0.3275911, %v575_v53  ;;  %v607_v0 = vsub.f32 0.0, %v575_v53 }
 0x40d   :  { %v576_v56 = vmul.f32 0.3275911, %v574_v54  ;;  %v606_v3 = vsub.f32 0.0, %v574_v54 }
 0x40e   :  { %v579_v57 = vadd.f32 1.0, %v577_v55  ;;  %v609_v6 = vmul.f32 %v607_v0, %v575_v53 }
 0x40f   :  { %v578_v58 = vadd.f32 1.0, %v576_v56  ;;  %v608_v9 = vmul.f32 %v606_v3, %v574_v54 }
 0x410   :  { %1788 = vrcp.f32 %v579_v57  ;;  %v612_v12 = vmul.f32 1.442695, %v609_v6 }
 0x411   :  { %1790 = vrcp.f32 %v578_v58  ;;  %v610_v15 = vmul.f32 1.442695, %v608_v9 }
 0x412   :  { %1792 = vpow2.f32 %v612_v12 }
 0x413   :  { %1794 = vpow2.f32 %v610_v15  ;;  %v706_v15 = vld [vmem:[%s2249_s1 + $0x18] sm:$0xff] }
 0x41a   :  { %v1789_v59 = vpop.eup %1788 }
 0x41b   :  { %v1791_v60 = vpop.eup %1790  ;;  %v583_v61 = vmul.f32 %v1789_v59, %v579_v57 }
 0x41c   :  { %v582_v1 = vmul.f32 %v1791_v60, %v578_v58  ;;  %v1793_v28 = vpop.eup %1792 }
 0x41d   :  { %v585_v2 = vsub.f32 2.0, %v583_v61  ;;  %v1795_v32 = vpop.eup %1794 }
 0x41e   :  { %v584_v4 = vsub.f32 2.0, %v582_v1 }
 0x41f   :  { %v587_v5 = vmul.f32 %v1789_v59, %v585_v2 }
 0x420   :  { %v586_v7 = vmul.f32 %v1791_v60, %v584_v4 }
 0x421   :  { %v589_v8 = vmul.f32 1.0614054, %v587_v5 }
 0x422   :  { %v588_v10 = vmul.f32 1.0614054, %v586_v7 }
 0x423   :  { %v591_v11 = vadd.f32 -1.4531521, %v589_v8 }
 0x424   :  { %v590_v13 = vadd.f32 -1.4531521, %v588_v10 }
 0x425   :  { %v593_v14 = vmul.f32 %v591_v11, %v587_v5 }
 0x426   :  { %v592_v16 = vmul.f32 %v590_v13, %v586_v7 }
 0x427   :  { %v595_v17 = vadd.f32 1.4214138, %v593_v14 }
 0x428   :  { %v594_v18 = vadd.f32 1.4214138, %v592_v16  ;;  %v887_v16 = vld [vmem:[#allocation3 + $0x100] sm:$0xff] }
 0x429   :  { %v597_v19 = vmul.f32 %v595_v17, %v587_v5  ;;  %v888_v17 = vld [vmem:[#allocation3 + $0x108] sm:$0xff] }
 0x42a   :  { %v596_v20 = vmul.f32 %v594_v18, %v586_v7  ;;  %v1685_v18 = vpack.c.bf16 %v888_v17, %v887_v16 }
 0x42b   :  { %v599_v21 = vadd.f32 -0.28449672, %v597_v19  ;;  %v708_v19 = vld [vmem:[%s2251_s3 + $0x58] sm:$0xff] }
 0x42c   :  { %v598_v22 = vadd.f32 -0.28449672, %v596_v20  ;;  %1686 = vmatprep.subr.bf16.mxu0 %v1685_v18  ;;  %v707_v20 = vld [vmem:[%s2251_s3 + $0x50] sm:$0xff] }
 0x42d   :  { %v601_v23 = vmul.f32 %v599_v21, %v587_v5 }
 0x42e   :  { %v600_v24 = vmul.f32 %v598_v22, %v586_v7 }
 0x42f   :  { %v603_v25 = vadd.f32 0.2548296, %v601_v23 }
 0x430   :  { %v602_v26 = vadd.f32 0.2548296, %v600_v24 }
 0x431   :  { %v605_v27 = vmul.f32 %v603_v25, %v587_v5 }
 0x432   :  { %v604_v29 = vmul.f32 %v602_v26, %v586_v7 }
 0x433   :  { %v615_v33 = vmul.f32 %v1793_v28, %v605_v27 }
 0x434   :  { %v614_v34 = vmul.f32 %v1795_v32, %v604_v29 }
 0x435   :  { %v617_v35 = vsub.f32 1.0, %v615_v33 }
 0x436   :  { %v616_v36 = vsub.f32 1.0, %v614_v34 }
 0x437   :  { %v621_v62 = vsub.f32 0.0, %v617_v35 }
 0x438   :  { %v620_v63 = vsub.f32 0.0, %v616_v36 }
 0x439   :  { %v623_v37 = vsel %vm619_vm4, %v621_v62, %v617_v35 }
 0x43a   :  { %v625_v38 = vadd.f32 1.0, %v623_v37  ;;  %v622_v39 = vsel %vm618_vm5, %v620_v63, %v616_v36 }
 0x43b   :  { %v624_v41 = vadd.f32 1.0, %v622_v39 }
 0x43c   :  { %v627_v44 = vmul.f32 %v625_v38, %v571_v42 }
 0x43d   :  { %v626_v43 = vmul.f32 %v624_v41, %v570_v40 }
 0x43f   :  { %1526 = vmatprep.mubr.f32.mxu0 %v626_v43 }
 0x440   :  { %1527 = vmatmul.mubr.f32.vlgmr.msra.gmra.mrb[2].mxu0 %v627_v44 }
 0x441   :  { %1688 = vmatpush3.bf16.msra.mxu0 %v1685_v18 }
 0x513   :  { %v1528_v47 = vpop.f32.mrb[2].mxu0 }
 0x514   :  { %v700_v49 = vadd.f32 %v1528_v47, %v259_v45  ;;  %v694_v51 = vpop.f32.mrb[3].mxu0 }
 0x515   :  { %v695_v52 = vadd.f32 %v694_v51, %v258_v46 }
 0x516   :  { %v2095_v50 = vadd.f32 %v700_v49, %v2057_v30  ;;  %v705_v30 = vld [vmem:[%s2249_s1 + $0x10] sm:$0xff] }
 0x517   :  { %v2098_v48 = vadd.f32 %v695_v52, %v2060_v31  ;;  %1533 = vmatprep.mubr.msk.f32.mxu1 %vm288_vm1, %v705_v30 }
 0x518   :  { %719 = vadd.xlane.f32.xlu0 %v2095_v50  ;;  %v722_v53 = vmul.f32 %v2095_v50, %v2095_v50 }
 0x519   :  { %717 = vadd.xlane.f32.xlu1 %v2098_v48  ;;  %v721_v54 = vmul.f32 %v2098_v48, %v2098_v48 }
 0x51c   :  { %725 = vadd.xlane.f32.xlu0 %v722_v53 }
 0x51d   :  { %723 = vadd.xlane.f32.xlu1 %v721_v54 }
 0x5a5   :  { %v720_v31 = vpop.xlane.xlu0 %719 }
 0x5a6   :  { %v728_v55 = vmul.f32 0.0078125, %v720_v31  ;;  %v718_v56 = vpop.xlane.xlu1 %717 }
 0x5a7   :  { %v727_v57 = vmul.f32 0.0078125, %v718_v56 }
 0x5a8   :  { %v732_v59 = vmul.f32 %v728_v55, %v728_v55  ;;  %v742_v8 = vsub.f32 %v2095_v50, %v728_v55 }
 0x5a9   :  { %v726_v58 = vpop.xlane.xlu0 %725  ;;  %v731_v0 = vmul.f32 %v727_v57, %v727_v57  ;;  %v741_v10 = vsub.f32 %v2098_v48, %v727_v57 }
 0x5aa   :  { %v730_v60 = vmul.f32 0.0078125, %v726_v58  ;;  %v724_v61 = vpop.xlane.xlu1 %723 }
 0x5ab   :  { %v729_v1 = vmul.f32 0.0078125, %v724_v61 }
 0x5ac   :  { %v734_v2 = vsub.f32 %v730_v60, %v732_v59 }
 0x5ad   :  { %v733_v3 = vsub.f32 %v729_v1, %v731_v0 }
 0x5ae   :  { %v736_v4 = vmax.f32 %v734_v2, 0.0 }
 0x5af   :  { %v735_v5 = vmax.f32 %v733_v3, 0.0 }
 0x5b0   :  { %v738_v6 = vadd.f32 1e-05, %v736_v4 }
 0x5b1   :  { %v737_v7 = vadd.f32 1e-05, %v735_v5 }
 0x5b2   :  { %1796 = vrsqrt.f32 %v738_v6 }
 0x5b3   :  { %1798 = vrsqrt.f32 %v737_v7 }
 0x5bc   :  { %v1797_v9 = vpop.eup %1796 }
 0x5bd   :  { %v1799_v11 = vpop.eup %1798  ;;  %v744_v12 = vmul.f32 %v1797_v9, %v742_v8 }
 0x5be   :  { %v743_v13 = vmul.f32 %v1799_v11, %v741_v10 }
 0x5c0   :  { %v1681_v14 = vpack.c.bf16 %v744_v12, %v743_v13 }
 0x5c2   :  { %1682 = vmatprep.subr.bf16.mxu1 %v1681_v14 }
 0x5c3   :  { %1684 = vmatpush3.bf16.msra.mxu1 %v1681_v14 }
 0x5c6   :  { %1534 = vmatmul.mubr.msk.f32.vlgmr.msra.gmra.mrb[2].mxu1 %vm288_vm1, %v706_v15 }
 0x699   :  { %v1535_v21 = vpop.f32.mrb[2].mxu1 }
 0x69a   :  { %v823_v22 = vadd.f32 %v1535_v21, %v708_v19  ;;  %v817_v23 = vpop.f32.mrb[3].mxu1 }
 0x69b   :  { %v818_v24 = vadd.f32 %v817_v23, %v707_v20  ;;  %v889_v23 = vld [vmem:[#allocation3 + $0x110] sm:$0xff] }
 0x69c   :  { %v829_v25 = vmul.f32 0.70710677, %v823_v22  ;;  %v827_v12 = vmul.f32 0.5, %v823_v22 }
 0x69d   :  { %v828_v26 = vmul.f32 0.70710677, %v818_v24  ;;  %v826_v15 = vmul.f32 0.5, %v818_v24  ;;  %v890_v24 = vld [vmem:[#allocation3 + $0x118] sm:$0xff] }
 0x69e   :  { %v831_v27 = vand.u32 2147483647, %v829_v25  ;;  %vm875_vm6 = vcmp.lt.f32.partialorder %v829_v25, 0.0  ;;  %v1689_v25 = vpack.c.bf16 %v890_v24, %v889_v23  ;;  %v912_v24 = vld [vmem:[#allocation3 + $0x1c0] sm:$0xff] }
 0x69f   :  { %v830_v28 = vand.u32 2147483647, %v828_v26  ;;  %vm874_vm7 = vcmp.lt.f32.partialorder %v828_v26, 0.0 }
 0x6a0   :  { %v833_v29 = vmul.f32 0.3275911, %v831_v27  ;;  %v863_v63 = vsub.f32 0.0, %v831_v27  ;;  %1690 = vmatprep.subr.bf16.mxu0 %v1689_v25 }
 0x6a1   :  { %v832_v32 = vmul.f32 0.3275911, %v830_v28  ;;  %v862_v39 = vsub.f32 0.0, %v830_v28  ;;  %1692 = vmatpush3.bf16.msra.mxu0 %v1689_v25  ;;  %v913_v25 = vld [vmem:[#allocation3 + $0x1c8] sm:$0xff] }
 0x6a2   :  { %v835_v33 = vadd.f32 1.0, %v833_v29  ;;  %v865_v42 = vmul.f32 %v863_v63, %v831_v27  ;;  %v893_v27 = vld [vmem:[#allocation3 + $0x130] sm:$0xff]  ;;  %v899_v63 = vld [vmem:[#allocation3 + $0x160] sm:$0xff] }
 0x6a3   :  { %v834_v34 = vadd.f32 1.0, %v832_v32  ;;  %v864_v45 = vmul.f32 %v862_v39, %v830_v28  ;;  %v894_v28 = vld [vmem:[#allocation3 + $0x138] sm:$0xff]  ;;  %v895_v32 = vld [vmem:[#allocation3 + $0x140] sm:$0xff]  ;;  %v901_v39 = vld [vmem:[#allocation3 + $0x170] sm:$0xff] }
 0x6a4   :  { %1800 = vrcp.f32 %v835_v33  ;;  %v868_v49 = vmul.f32 1.442695, %v865_v42  ;;  %v1697_v29 = vpack.c.bf16 %v894_v28, %v893_v27  ;;  %v916_v28 = vld [vmem:[#allocation3 + $0x1e0] sm:$0xff] }
 0x6a5   :  { %1802 = vrcp.f32 %v834_v34  ;;  %v866_v53 = vmul.f32 1.442695, %v864_v45 }
 0x6a6   :  { %1804 = vpow2.f32 %v868_v49 }
 0x6a7   :  { %1806 = vpow2.f32 %v866_v53 }
 0x6ae   :  { %v1801_v35 = vpop.eup %1800 }
 0x6af   :  { %v1803_v36 = vpop.eup %1802  ;;  %v839_v62 = vmul.f32 %v1801_v35, %v835_v33  ;;  %v896_v33 = vld [vmem:[#allocation3 + $0x148] sm:$0xff] }
 0x6b0   :  { %v838_v37 = vmul.f32 %v1803_v36, %v834_v34  ;;  %v1805_v2 = vpop.eup %1804  ;;  %v1701_v34 = vpack.c.bf16 %v896_v33, %v895_v32  ;;  %v918_v33 = vld [vmem:[#allocation3 + $0x1f0] sm:$0xff] }
 0x6b1   :  { %v841_v38 = vsub.f32 2.0, %v839_v62  ;;  %v1807_v4 = vpop.eup %1806 }
 0x6b2   :  { %v840_v40 = vsub.f32 2.0, %v838_v37  ;;  %v900_v37 = vld [vmem:[#allocation3 + $0x168] sm:$0xff] }
 0x6b3   :  { %v843_v41 = vmul.f32 %v1801_v35, %v841_v38  ;;  %v897_v35 = vld [vmem:[#allocation3 + $0x150] sm:$0xff]  ;;  %v1709_v38 = vpack.c.bf16 %v900_v37, %v899_v63 }
 0x6b4   :  { %v842_v43 = vmul.f32 %v1803_v36, %v840_v40  ;;  %v898_v36 = vld [vmem:[#allocation3 + $0x158] sm:$0xff] }
 0x6b5   :  { %v845_v44 = vmul.f32 1.0614054, %v843_v41  ;;  %v1705_v62 = vpack.c.bf16 %v898_v36, %v897_v35  ;;  %v902_v40 = vld [vmem:[#allocation3 + $0x178] sm:$0xff] }
 0x6b6   :  { %v844_v46 = vmul.f32 1.0614054, %v842_v43  ;;  %v714_v36 = vld [vmem:[%s2251_s3 + $0x88] sm:$0xff] }
 0x6b7   :  { %v847_v47 = vadd.f32 -1.4531521, %v845_v44 }
 0x6b8   :  { %v846_v51 = vadd.f32 -1.4531521, %v844_v46 }
 0x6b9   :  { %v849_v52 = vmul.f32 %v847_v47, %v843_v41 }
 0x6ba   :  { %v848_v54 = vmul.f32 %v846_v51, %v842_v43 }
 0x6bb   :  { %v851_v30 = vadd.f32 1.4214138, %v849_v52 }
 0x6bc   :  { %v850_v31 = vadd.f32 1.4214138, %v848_v54 }
 0x6bd   :  { %v853_v55 = vmul.f32 %v851_v30, %v843_v41 }
 0x6be   :  { %v852_v56 = vmul.f32 %v850_v31, %v842_v43 }
 0x6bf   :  { %v855_v57 = vadd.f32 -0.28449672, %v853_v55 }
 0x6c0   :  { %v854_v58 = vadd.f32 -0.28449672, %v852_v56 }
 0x6c1   :  { %v857_v59 = vmul.f32 %v855_v57, %v843_v41 }
 0x6c2   :  { %v856_v60 = vmul.f32 %v854_v58, %v842_v43 }
 0x6c3   :  { %v859_v61 = vadd.f32 0.2548296, %v857_v59 }
 0x6c4   :  { %v858_v0 = vadd.f32 0.2548296, %v856_v60 }
 0x6c5   :  { %v861_v1 = vmul.f32 %v859_v61, %v843_v41  ;;  %v1713_v41 = vpack.c.bf16 %v902_v40, %v901_v39  ;;  %v710_v61 = vld [vmem:[%s2251_s3 + $0x68] sm:$0xff] }
 0x6c6   :  { %v860_v3 = vmul.f32 %v858_v0, %v842_v43 }
 0x6c7   :  { %v871_v5 = vmul.f32 %v1805_v2, %v861_v1  ;;  %v709_v1 = vld [vmem:[%s2251_s3 + $0x60] sm:$0xff] }
 0x6c8   :  { %v870_v6 = vmul.f32 %v1807_v4, %v860_v3  ;;  %v711_v4 = vld [vmem:[%s2251_s3 + $0x70] sm:$0xff] }
 0x6c9   :  { %v873_v7 = vsub.f32 1.0, %v871_v5 }
 0x6ca   :  { %v872_v8 = vsub.f32 1.0, %v870_v6 }
 0x6cb   :  { %v877_v9 = vsub.f32 0.0, %v873_v7 }
 0x6cc   :  { %v876_v10 = vsub.f32 0.0, %v872_v8 }
 0x6cd   :  { %v879_v11 = vsel %vm875_vm6, %v877_v9, %v873_v7  ;;  %v712_v7 = vld [vmem:[%s2251_s3 + $0x78] sm:$0xff] }
 0x6ce   :  { %v881_v13 = vadd.f32 1.0, %v879_v11  ;;  %v878_v14 = vsel %vm874_vm7, %v876_v10, %v872_v8  ;;  %v904_v10 = vld [vmem:[#allocation3 + $0x180] sm:$0xff]  ;;  %v905_v11 = vld [vmem:[#allocation3 + $0x188] sm:$0xff] }
 0x6cf   :  { %v880_v16 = vadd.f32 1.0, %v878_v14  ;;  %v907_v14 = vld [vmem:[#allocation3 + $0x198] sm:$0xff] }
 0x6d0   :  { %v883_v17 = vmul.f32 %v881_v13, %v827_v12  ;;  %v1717_v12 = vpack.c.bf16 %v905_v11, %v904_v10  ;;  %v906_v13 = vld [vmem:[#allocation3 + $0x190] sm:$0xff] }
 0x6d1   :  { %v882_v18 = vmul.f32 %v880_v16, %v826_v15  ;;  %v1721_v15 = vpack.c.bf16 %v907_v14, %v906_v13  ;;  %v908_v16 = vld [vmem:[#allocation3 + $0x1a0] sm:$0xff] }
 0x6d2   :  { %v2123_v19 = vadd.f32 %v883_v17, %v2095_v50  ;;  %v891_v50 = vld [vmem:[#allocation3 + $0x120] sm:$0xff]  ;;  %1718 = vmatprep.subr.bf16.mxu1 %v1717_v12  ;;  %v909_v17 = vld [vmem:[#allocation3 + $0x1a8] sm:$0xff] }
 0x6d3   :  { %v2126_v20 = vadd.f32 %v882_v18, %v2098_v48  ;;  %v892_v48 = vld [vmem:[#allocation3 + $0x128] sm:$0xff]  ;;  %1720 = vmatpush3.bf16.msra.mxu1 %v1717_v12  ;;  %v1725_v18 = vpack.c.bf16 %v909_v17, %v908_v16 }
 0x6d4   :  { %922 = vadd.xlane.f32.xlu0 %v2123_v19  ;;  %v925_v21 = vmul.f32 %v2123_v19, %v2123_v19  ;;  %v1693_v26 = vpack.c.bf16 %v892_v48, %v891_v50  ;;  %1722 = vmatprep.subr.bf16.mxu1 %v1721_v15  ;;  %v1733_v50 = vpack.c.bf16 %v913_v25, %v912_v24  ;;  %v914_v48 = vld [vmem:[#allocation3 + $0x1d0] sm:$0xff] }
 0x6d5   :  { %920 = vadd.xlane.f32.xlu1 %v2126_v20  ;;  %v924_v22 = vmul.f32 %v2126_v20, %v2126_v20 }
 0x6d6   :  { %1694 = vmatprep.subr.bf16.mxu0 %v1693_v26 }
 0x6d7   :  { %1696 = vmatpush3.bf16.msra.mxu0 %v1693_v26  ;;  %1724 = vmatpush3.bf16.msra.mxu1 %v1721_v15  ;;  %v915_v26 = vld [vmem:[#allocation3 + $0x1d8] sm:$0xff] }
 0x6d8   :  { %928 = vadd.xlane.f32.xlu0 %v925_v21  ;;  %1698 = vmatprep.subr.bf16.mxu0 %v1697_v29  ;;  %v910_v21 = vld [vmem:[#allocation3 + $0x1b0] sm:$0xff]  ;;  %v1737_v27 = vpack.c.bf16 %v915_v26, %v914_v48 }
 0x6d9   :  { %926 = vadd.xlane.f32.xlu1 %v924_v22  ;;  %1726 = vmatprep.subr.bf16.mxu1 %v1725_v18  ;;  %v911_v22 = vld [vmem:[#allocation3 + $0x1b8] sm:$0xff] }
 0x6da   :  { %v1729_v23 = vpack.c.bf16 %v911_v22, %v910_v21 }
 0x6db   :  { %1700 = vmatpush3.bf16.msra.mxu0 %v1697_v29  ;;  %1728 = vmatpush3.bf16.msra.mxu1 %v1725_v18  ;;  %v917_v29 = vld [vmem:[#allocation3 + $0x1e8] sm:$0xff] }
 0x6dc   :  { %1702 = vmatprep.subr.bf16.mxu0 %v1701_v34  ;;  %1730 = vmatprep.subr.bf16.mxu1 %v1729_v23  ;;  %v1741_v32 = vpack.c.bf16 %v917_v29, %v916_v28 }
 0x6df   :  { %1704 = vmatpush3.bf16.msra.mxu0 %v1701_v34  ;;  %1732 = vmatpush3.bf16.msra.mxu1 %v1729_v23  ;;  %v919_v34 = vld [vmem:[#allocation3 + $0x1f8] sm:$0xff] }
 0x6e0   :  { %1706 = vmatprep.subr.bf16.mxu0 %v1705_v62  ;;  %1734 = vmatprep.subr.bf16.mxu1 %v1733_v50  ;;  %v1745_v35 = vpack.c.bf16 %v919_v34, %v918_v33 }
 0x6e3   :  { %1708 = vmatpush3.bf16.msra.mxu0 %v1705_v62  ;;  %1736 = vmatpush3.bf16.msra.mxu1 %v1733_v50  ;;  %v713_v62 = vld [vmem:[%s2251_s3 + $0x80] sm:$0xff] }
 0x6e4   :  { %1710 = vmatprep.subr.bf16.mxu0 %v1709_v38  ;;  %1738 = vmatprep.subr.bf16.mxu1 %v1737_v27 }
 0x6e7   :  { %1712 = vmatpush3.bf16.msra.mxu0 %v1709_v38  ;;  %1740 = vmatpush3.bf16.msra.mxu1 %v1737_v27 }
 0x6e8   :  { %1714 = vmatprep.subr.bf16.mxu0 %v1713_v41  ;;  %1742 = vmatprep.subr.bf16.mxu1 %v1741_v32 }
 0x6eb   :  { %1716 = vmatpush3.bf16.msra.mxu0 %v1713_v41  ;;  %1744 = vmatpush3.bf16.msra.mxu1 %v1741_v32 }
 0x6ec   :  { %1746 = vmatprep.subr.bf16.mxu1 %v1745_v35 }
 0x6ef   :  { %1748 = vmatpush3.bf16.msra.mxu1 %v1745_v35 }
 0x761   :  { %v923_v42 = vpop.xlane.xlu0 %922 }
 0x762   :  { %v931_v43 = vmul.f32 0.0078125, %v923_v42  ;;  %v921_v44 = vpop.xlane.xlu1 %920 }
 0x763   :  { %v930_v45 = vmul.f32 0.0078125, %v921_v44 }
 0x764   :  { %v935_v47 = vmul.f32 %v931_v43, %v931_v43  ;;  %v945_v58 = vsub.f32 %v2123_v19, %v931_v43 }
 0x765   :  { %v929_v46 = vpop.xlane.xlu0 %928  ;;  %v934_v52 = vmul.f32 %v930_v45, %v930_v45  ;;  %v944_v60 = vsub.f32 %v2126_v20, %v930_v45 }
 0x766   :  { %v933_v49 = vmul.f32 0.0078125, %v929_v46  ;;  %v927_v51 = vpop.xlane.xlu1 %926 }
 0x767   :  { %v932_v53 = vmul.f32 0.0078125, %v927_v51 }
 0x768   :  { %v937_v54 = vsub.f32 %v933_v49, %v935_v47 }
 0x769   :  { %v936_v30 = vsub.f32 %v932_v53, %v934_v52 }
 0x76a   :  { %v939_v31 = vmax.f32 %v937_v54, 0.0 }
 0x76b   :  { %v938_v55 = vmax.f32 %v936_v30, 0.0 }
 0x76c   :  { %v941_v56 = vadd.f32 1e-05, %v939_v31 }
 0x76d   :  { %v940_v57 = vadd.f32 1e-05, %v938_v55 }
 0x76e   :  { %1808 = vrsqrt.f32 %v941_v56 }
 0x76f   :  { %1810 = vrsqrt.f32 %v940_v57 }
 0x778   :  { %v1809_v59 = vpop.eup %1808 }
 0x779   :  { %v1811_v0 = vpop.eup %1810  ;;  %v947_v2 = vmul.f32 %v1809_v59, %v945_v58 }
 0x77a   :  { %v946_v3 = vmul.f32 %v1811_v0, %v944_v60 }
 0x77b   :  { %v949_v5 = vmul.f32 %v947_v2, %v710_v61 }
 0x77c   :  { %v948_v6 = vmul.f32 %v946_v3, %v709_v1 }
 0x77d   :  { %v951_v9 = vadd.f32 %v949_v5, %v712_v7 }
 0x77e   :  { %v950_v8 = vadd.f32 %v948_v6, %v711_v4 }
 0x780   :  { %1568 = vmatprep.mubr.f32.mxu0 %v950_v8 }
 0x781   :  { %1569 = vmatmul.mubr.f32.vlgmr.msra.gmra.mrb[4].mxu0 %v951_v9 }
 0x854   :  { %v1570_v63 = vpop.f32.mrb[4].mxu0 }
 0x855   :  { %v1024_v37 = vadd.f32 %v1570_v63, %v714_v36  ;;  %v1018_v38 = vpop.f32.mrb[5].mxu0  ;;  %v1861_v36 = vmov 0.0|0.0   ;;  %v716_v63 = vld [vmem:[%s2251_s3 + $0x98] sm:$0xff] }
 0x856   :  { %v1019_v39 = vadd.f32 %v1018_v38, %v713_v62  ;;  %1749 = vmatprep.subr.bf16.mxu0 %v1861_v36  ;;  %v1863_v62 = vmov 0.0   ;;  %v715_v38 = vld [vmem:[%s2251_s3 + $0x90] sm:$0xff] }
 0x857   :  { %v1030_v40 = vmul.f32 0.70710677, %v1024_v37  ;;  %v1028_v33 = vmul.f32 0.5, %v1024_v37  ;;  %1610 = vmatprep.mubr.msk.f32.mxu0 %vm1862_vm10, %v1863_v62 }
 0x858   :  { %v1029_v41 = vmul.f32 0.70710677, %v1019_v39  ;;  %v1027_v29 = vmul.f32 0.5, %v1019_v39 }
 0x859   :  { %v1032_v42 = vand.u32 2147483647, %v1030_v40  ;;  %vm1076_vm8 = vcmp.lt.f32.partialorder %v1030_v40, 0.0 }
 0x85a   :  { %v1031_v43 = vand.u32 2147483647, %v1029_v41  ;;  %vm1075_vm9 = vcmp.lt.f32.partialorder %v1029_v41, 0.0 }
 0x85b   :  { %v1034_v44 = vmul.f32 0.3275911, %v1032_v42  ;;  %v1064_v53 = vsub.f32 0.0, %v1032_v42 }
 0x85c   :  { %v1033_v45 = vmul.f32 0.3275911, %v1031_v43  ;;  %v1063_v31 = vsub.f32 0.0, %v1031_v43 }
 0x85d   :  { %v1036_v46 = vadd.f32 1.0, %v1034_v44  ;;  %v1066_v57 = vmul.f32 %v1064_v53, %v1032_v42 }
 0x85e   :  { %v1035_v47 = vadd.f32 1.0, %v1033_v45  ;;  %v1065_v60 = vmul.f32 %v1063_v31, %v1031_v43  ;;  %v1162_v45 = vld [vmem:[%s2249_s1 + $0x20] sm:$0xff] }
 0x85f   :  { %1812 = vrcp.f32 %v1036_v46  ;;  %v1069_v1 = vmul.f32 1.442695, %v1066_v57 }
 0x860   :  { %1814 = vrcp.f32 %v1035_v47  ;;  %v1067_v4 = vmul.f32 1.442695, %v1065_v60 }
 0x861   :  { %1816 = vpow2.f32 %v1069_v1 }
 0x862   :  { %1818 = vpow2.f32 %v1067_v4 }
 0x869   :  { %v1813_v49 = vpop.eup %1812 }
 0x86a   :  { %v1815_v51 = vpop.eup %1814  ;;  %v1040_v52 = vmul.f32 %v1813_v49, %v1036_v46  ;;  %v1163_v46 = vld [vmem:[%s2251_s3 + $0xa0] sm:$0xff] }
 0x86b   :  { %v1039_v54 = vmul.f32 %v1815_v51, %v1035_v47  ;;  %v1817_v17 = vpop.eup %1816 }
 0x86c   :  { %v1042_v30 = vsub.f32 2.0, %v1040_v52  ;;  %v1819_v21 = vpop.eup %1818 }
 0x86d   :  { %v1041_v55 = vsub.f32 2.0, %v1039_v54 }
 0x86e   :  { %v1044_v56 = vmul.f32 %v1813_v49, %v1042_v30 }
 0x86f   :  { %v1043_v58 = vmul.f32 %v1815_v51, %v1041_v55 }
 0x870   :  { %v1046_v59 = vmul.f32 1.0614054, %v1044_v56 }
 0x871   :  { %v1045_v61 = vmul.f32 1.0614054, %v1043_v58 }
 0x872   :  { %v1048_v0 = vadd.f32 -1.4531521, %v1046_v59 }
 0x873   :  { %v1047_v2 = vadd.f32 -1.4531521, %v1045_v61 }
 0x874   :  { %v1050_v3 = vmul.f32 %v1048_v0, %v1044_v56 }
 0x875   :  { %v1049_v5 = vmul.f32 %v1047_v2, %v1043_v58 }
 0x876   :  { %v1052_v6 = vadd.f32 1.4214138, %v1050_v3 }
 0x877   :  { %v1051_v7 = vadd.f32 1.4214138, %v1049_v5 }
 0x878   :  { %v1054_v8 = vmul.f32 %v1052_v6, %v1044_v56 }
 0x879   :  { %v1053_v9 = vmul.f32 %v1051_v7, %v1043_v58 }
 0x87a   :  { %v1056_v10 = vadd.f32 -0.28449672, %v1054_v8 }
 0x87b   :  { %v1055_v11 = vadd.f32 -0.28449672, %v1053_v9 }
 0x87c   :  { %v1058_v12 = vmul.f32 %v1056_v10, %v1044_v56 }
 0x87d   :  { %v1057_v13 = vmul.f32 %v1055_v11, %v1043_v58 }
 0x87e   :  { %v1060_v14 = vadd.f32 0.2548296, %v1058_v12 }
 0x87f   :  { %v1059_v15 = vadd.f32 0.2548296, %v1057_v13 }
 0x880   :  { %v1062_v16 = vmul.f32 %v1060_v14, %v1044_v56 }
 0x881   :  { %v1061_v18 = vmul.f32 %v1059_v15, %v1043_v58 }
 0x882   :  { %v1072_v22 = vmul.f32 %v1817_v17, %v1062_v16 }
 0x883   :  { %v1071_v23 = vmul.f32 %v1819_v21, %v1061_v18 }
 0x884   :  { %v1074_v24 = vsub.f32 1.0, %v1072_v22 }
 0x885   :  { %v1073_v25 = vsub.f32 1.0, %v1071_v23 }
 0x886   :  { %v1078_v50 = vsub.f32 0.0, %v1074_v24 }
 0x887   :  { %v1077_v48 = vsub.f32 0.0, %v1073_v25 }
 0x888   :  { %v1080_v26 = vsel %vm1076_vm8, %v1078_v50, %v1074_v24 }
 0x889   :  { %v1082_v27 = vadd.f32 1.0, %v1080_v26  ;;  %v1079_v28 = vsel %vm1075_vm9, %v1077_v48, %v1073_v25 }
 0x88a   :  { %v1081_v32 = vadd.f32 1.0, %v1079_v28 }
 0x88b   :  { %v1084_v35 = vmul.f32 %v1082_v27, %v1028_v33 }
 0x88c   :  { %v1083_v34 = vmul.f32 %v1081_v32, %v1027_v29 }
 0x88e   :  { %1603 = vmatprep.mubr.f32.mxu1 %v1083_v34 }
 0x88f   :  { %1604 = vmatmul.mubr.f32.vlgmr.msra.gmra.mrb[4].mxu1 %v1084_v35 }
 0x962   :  { %v1605_v39 = vpop.f32.mrb[4].mxu1 }
 0x963   :  { %v1157_v40 = vadd.f32 %v1605_v39, %v716_v63  ;;  %v1151_v37 = vpop.f32.mrb[5].mxu1 }
 0x964   :  { %v1152_v41 = vadd.f32 %v1151_v37, %v715_v38 }
 0x965   :  { %v1161_v42 = vadd.f32 %v1157_v40, %v2123_v19 }
 0x966   :  { %v1160_v43 = vadd.f32 %v1152_v41, %v2126_v20 }
 0x968   :  { %v1750_v44 = vpack.c.bf16 %v1161_v42, %v1160_v43 }
 0x96a   :  { %1751 = vmatpush3.bf16.msra.mxu0 %v1750_v44 }
 0x96d   :  { %1611 = vmatmul.mubr.msk.f32.vlgmr.msra.gmra.mrb[6].mxu0 %vm288_vm1, %v1162_v45 }
 0xa40   :  { %v1233_v47 = vpop.f32.mrb[6].mxu0 }
 0xa41   :  { %v1234_v49 = vadd.f32 %v1233_v47, %v1163_v46  ;;  %v1612_v51 = vpop.f32.mrb[7].mxu0 }
 0xa43   :  { %1237 = vst.msk [vmem:[%s2252_s4] sm:$0xff] %vm33_vm0, %v1234_v49  ;;  %1244 = vrot.lane.b32.xlu0 %v1234_v49, %s1859_s11  ;;  %1239 = vrot.lane.b32.xlu1 %v1234_v49, %s1860_s19 }
 0xa47   :  { %1259 = vrot.lane.b32.xlu0 %v1234_v49, %s1856_s13  ;;  %1249 = vrot.lane.b32.xlu1 %v1234_v49, %s1858_s29 }
 0xa4b   :  { %1269 = vrot.lane.b32.xlu0 %v1234_v49, %s1854_s27  ;;  %1254 = vrot.lane.b32.xlu1 %v1234_v49, %s1857_s21 }
 0xa4f   :  { %1279 = vrot.lane.b32.xlu0 %v1234_v49, %s1852_s14  ;;  %1264 = vrot.lane.b32.xlu1 %v1234_v49, %s1855_s8 }
 0xa53   :  { %1289 = vrot.lane.b32.xlu0 %v1234_v49, %s1850_s30  ;;  %1274 = vrot.lane.b32.xlu1 %v1234_v49, %s1853_s20 }
 0xa57   :  { %1299 = vrot.lane.b32.xlu0 %v1234_v49, %s1848_s15  ;;  %1284 = vrot.lane.b32.xlu1 %v1234_v49, %s1851_s2 }
 0xa5b   :  { %1309 = vrot.lane.b32.xlu0 %v1234_v49, %s1846_s26  ;;  %1294 = vrot.lane.b32.xlu1 %v1234_v49, %s1849_s24 }
 0xa5f   :  { %1304 = vrot.lane.b32.xlu1 %v1234_v49, %s1847_s7 }
 0xab5   :  { %v1245_v19 = vpop.permute.xlu0 %1244  ;;  %v1240_v20 = vpop.permute.xlu1 %1239 }
 0xab6   :  { %1355 = vst.msk [vmem:[%s2252_s4 + $0x10] sm:$0xff] %vm33_vm0, %v1245_v19  ;;  %1354 = vst.msk [vmem:[%s2252_s4 + $0x8] sm:$0xff] %vm33_vm0, %v1240_v20 }
 0xab9   :  { %v1260_v52 = vpop.permute.xlu0 %1259  ;;  %v1250_v53 = vpop.permute.xlu1 %1249 }
 0xaba   :  { %1358 = vst.msk [vmem:[%s2252_s4 + $0x28] sm:$0xff] %vm33_vm0, %v1260_v52  ;;  %1356 = vst.msk [vmem:[%s2252_s4 + $0x18] sm:$0xff] %vm33_vm0, %v1250_v53 }
 0xabd   :  { %v1270_v54 = vpop.permute.xlu0 %1269  ;;  %v1255_v30 = vpop.permute.xlu1 %1254 }
 0xabe   :  { %1360 = vst.msk [vmem:[%s2252_s4 + $0x38] sm:$0xff] %vm33_vm0, %v1270_v54  ;;  %1357 = vst.msk [vmem:[%s2252_s4 + $0x20] sm:$0xff] %vm33_vm0, %v1255_v30 }
 0xac1   :  { %v1280_v31 = vpop.permute.xlu0 %1279  ;;  %v1265_v55 = vpop.permute.xlu1 %1264 }
 0xac2   :  { %1362 = vst.msk [vmem:[%s2252_s4 + $0x48] sm:$0xff] %vm33_vm0, %v1280_v31  ;;  %1359 = vst.msk [vmem:[%s2252_s4 + $0x30] sm:$0xff] %vm33_vm0, %v1265_v55 }
 0xac5   :  { %v1290_v56 = vpop.permute.xlu0 %1289  ;;  %v1275_v57 = vpop.permute.xlu1 %1274 }
 0xac6   :  { %1364 = vst.msk [vmem:[%s2252_s4 + $0x58] sm:$0xff] %vm33_vm0, %v1290_v56  ;;  %1361 = vst.msk [vmem:[%s2252_s4 + $0x40] sm:$0xff] %vm33_vm0, %v1275_v57 }
 0xac9   :  { %v1300_v58 = vpop.permute.xlu0 %1299  ;;  %v1285_v59 = vpop.permute.xlu1 %1284 }
 0xaca   :  { %1366 = vst.msk [vmem:[%s2252_s4 + $0x68] sm:$0xff] %vm33_vm0, %v1300_v58  ;;  %1363 = vst.msk [vmem:[%s2252_s4 + $0x50] sm:$0xff] %vm33_vm0, %v1285_v59 }
 0xacd   :  { %v1310_v60 = vpop.permute.xlu0 %1309  ;;  %v1295_v61 = vpop.permute.xlu1 %1294 }
 0xace   :  { %1368 = vst.msk [vmem:[%s2252_s4 + $0x78] sm:$0xff] %vm33_vm0, %v1310_v60  ;;  %1365 = vst.msk [vmem:[%s2252_s4 + $0x60] sm:$0xff] %vm33_vm0, %v1295_v61 }
 0xad1   :  { %v1305_v0 = vpop.permute.xlu1 %1304 }
 0xad2   :  { %1367 = vst.msk [vmem:[%s2252_s4 + $0x70] sm:$0xff] %vm33_vm0, %v1305_v0 }
 0xad3   :  { %1318 = vsyncpa [#allocation4], 1 }

</bundles_post_ra>
